<compile_context>
chip_gen: v5e
topology: v5e:2x2
jax: 0.10.0
libtpu: 0.0.40
codegen_flags: <defaults>
</compile_context>

<pallas_src>
import jax
import jax.numpy as jnp
from jax.experimental import pallas as pl
from jax.experimental.pallas import tpu as pltpu

# Logical (PyTorch) sizes.
N0, N1, N2, NOUT = 3072, 25, 1000, 5
# Lane-dense (padded) sizes used inside the kernel.
N1P, N2P, NOUTP = 128, 1024, 128


def _round_up(x, m):
    return ((x + m - 1) // m) * m


def _pad2(a, rows, cols):
    out = jnp.zeros((rows, cols), a.dtype)
    return out.at[: a.shape[0], : a.shape[1]].set(a)


def mlp_kernel(x_ref, w1_ref, b1_ref, w2_ref, b2_ref, w3_ref, b3_ref, o_ref):
    # x block: (TB, 3072) f32 straight from HBM; cast to bf16 in VMEM.
    x = x_ref[...].astype(jnp.bfloat16)
    h1 = jnp.dot(x, w1_ref[...], preferred_element_type=jnp.float32)       # (TB, 128)
    h1 = jnp.maximum(h1 + b1_ref[...], 0.0)                                # f32 ReLU
    h2 = jnp.dot(h1.astype(jnp.bfloat16), w2_ref[...],
                 preferred_element_type=jnp.float32)                       # (TB, 1024)
    h2 = jnp.maximum(h2 + b2_ref[...], 0.0)
    o = jnp.dot(h2.astype(jnp.bfloat16), w3_ref[...],
                preferred_element_type=jnp.float32)                        # (TB, 128)
    o_ref[...] = (o + b3_ref[...]).astype(o_ref.dtype)                     # bf16 lane-dense store


def prepare_params(p):
    """One-time: pad to lane-dense shapes; weights -> bf16, biases stay f32."""
    return {
        "w1": _pad2(p["w1"], N0, N1P).astype(jnp.bfloat16),
        "b1": _pad2(p["b1"], 1, N1P),
        "w2": _pad2(p["w2"], N1P, N2P).astype(jnp.bfloat16),
        "b2": _pad2(p["b2"], 1, N2P),
        "w3": _pad2(p["w3"], N2P, NOUTP).astype(jnp.bfloat16),
        "b3": _pad2(p["b3"], 1, NOUTP),
    }


def _choose_tb(batch):
    """Batch tile: 16-row multiples, >=2 grid steps for mid batches, cap 512."""
    if batch < 256:
        return _round_up(batch, 16)
    return min(512, _round_up(pl.cdiv(batch, 2), 16))


def net_forward(x, pp, tb=None):
    """x: (B, 3072) float32; pp: padded/bf16 params from prepare_params()."""
    B = x.shape[0]
    TB = _choose_tb(B) if tb is None else tb
    grid = (pl.cdiv(B, TB),)

    def _resident(rows, cols):
        # Constant index_map -> block never changes; single-buffer it.
        return pl.BlockSpec((rows, cols), lambda i: (0, 0),
                            pipeline_mode=pl.Buffered(1))

    out_padded = pl.pallas_call(
        mlp_kernel,
        out_shape=jax.ShapeDtypeStruct((B, NOUTP), jnp.bfloat16),
        grid=grid,
        in_specs=[
            pl.BlockSpec((TB, N0), lambda i: (i, 0)),   # x: f32, streamed over batch
            _resident(N0, N1P),                         # w1 (bf16)
            _resident(1, N1P),                          # b1 (f32)
            _resident(N1P, N2P),                        # w2
            _resident(1, N2P),                          # b2
            _resident(N2P, NOUTP),                      # w3
            _resident(1, NOUTP),                        # b3
        ],
        out_specs=pl.BlockSpec((TB, NOUTP), lambda i: (i, 0)),
        compiler_params=pltpu.CompilerParams(
            dimension_semantics=("parallel",),
            vmem_limit_bytes=32 * 1024 * 1024,
        ),
    )(x, pp["w1"], pp["b1"], pp["w2"], pp["b2"], pp["w3"], pp["b3"])

    # Drop the padded output columns, hand back f32 for downstream code.
    return out_padded[:, :NOUT].astype(jnp.float32)


def init_params(key):
    """Deterministic init mimicking torch.nn.Linear default (uniform +-1/sqrt(fan_in))."""
    ks = jax.random.split(key, 6)

    def linear(kw, kb, fan_in, fan_out):
        bound = 1.0 / jnp.sqrt(float(fan_in))
        # PyTorch stores weight as (out, in); transpose once to (in, out) for x @ W.
        w = jax.random.uniform(kw, (fan_out, fan_in), jnp.float32, -bound, bound).T
        b = jax.random.uniform(kb, (1, fan_out), jnp.float32, -bound, bound)
        return w, b

    w1, b1 = linear(ks[0], ks[1], N0, N1)
    w2, b2 = linear(ks[2], ks[3], N1, N2)
    w3, b3 = linear(ks[4], ks[5], N2, NOUT)
    return {"w1": w1, "b1": b1, "w2": w2, "b2": b2, "w3": w3, "b3": b3}


def reference_forward(x, p):
    """Pure-JAX reference using the same bf16-operand / f32-accum / bf16-out recipe."""
    xb = x.astype(jnp.bfloat16)
    h1 = jnp.dot(xb, p["w1"].astype(jnp.bfloat16),
                 preferred_element_type=jnp.float32) + p["b1"]
    h1 = jnp.maximum(h1, 0.0)
    h2 = jnp.dot(h1.astype(jnp.bfloat16), p["w2"].astype(jnp.bfloat16),
                 preferred_element_type=jnp.float32) + p["b2"]
    h2 = jnp.maximum(h2, 0.0)
    o = jnp.dot(h2.astype(jnp.bfloat16), p["w3"].astype(jnp.bfloat16),
                preferred_element_type=jnp.float32) + p["b3"]
    return o.astype(jnp.bfloat16).astype(jnp.float32)


if __name__ == "__main__":
    key = jax.random.PRNGKey(0)
    k_x, k_p = jax.random.split(key)

    params = init_params(k_p)
    padded_params = prepare_params(params)

    # Small test: single (oversized) tile, masked writeback on the ragged rows.
    B = 2
    x = jax.random.normal(k_x, (B, N0), dtype=jnp.float32)
    out = jax.block_until_ready(net_forward(x, padded_params))
    ref = reference_forward(x, params)
    assert out.shape == (B, NOUT)
    assert jnp.allclose(out, ref, atol=1e-2, rtol=1e-2), "mismatch vs pure-JAX reference (B=2)"

    # Second test: multi-step batch grid with a ragged last tile (20 = 16 + 4).
    B2 = 20
    x2 = jax.random.normal(jax.random.fold_in(k_x, 1), (B2, N0), dtype=jnp.float32)
    out2 = jax.block_until_ready(net_forward(x2, padded_params, tb=16))
    ref2 = reference_forward(x2, params)
    assert out2.shape == (B2, NOUT)
    assert jnp.allclose(out2, ref2, atol=1e-2, rtol=1e-2), "mismatch vs pure-JAX reference (B=20)"

    print("KERNEL_OK")
</pallas_src>

<mosaic_0001>
module attributes {stable_mosaic.version = 11 : i64} {
  func.func @mlp_kernel(%arg0: i32, %arg1: memref<16x3072xf32, #tpu.memory_space<vmem>>, %arg2: memref<3072x128xbf16, #tpu.memory_space<vmem>>, %arg3: memref<1x128xf32, #tpu.memory_space<vmem>>, %arg4: memref<128x1024xbf16, #tpu.memory_space<vmem>>, %arg5: memref<1x1024xf32, #tpu.memory_space<vmem>>, %arg6: memref<1024x128xbf16, #tpu.memory_space<vmem>>, %arg7: memref<1x128xf32, #tpu.memory_space<vmem>>, %arg8: memref<16x128xbf16, #tpu.memory_space<vmem>>) attributes {dimension_semantics = [#tpu.dimension_semantics<parallel>], iteration_bounds = array<i64: 1>, scalar_prefetch = 0 : i64, scratch_operands = 0 : i64, tpu.core_type = #tpu.core_type<tc>, window_params = [{transform_indices = @transform_0, window_bounds = array<i64: 16, 3072>}, {pipeline_mode = #tpu.pipeline_mode<synchronous>, transform_indices = @transform_1, window_bounds = array<i64: 3072, 128>}, {pipeline_mode = #tpu.pipeline_mode<synchronous>, transform_indices = @transform_2, window_bounds = array<i64: 1, 128>}, {pipeline_mode = #tpu.pipeline_mode<synchronous>, transform_indices = @transform_3, window_bounds = array<i64: 128, 1024>}, {pipeline_mode = #tpu.pipeline_mode<synchronous>, transform_indices = @transform_4, window_bounds = array<i64: 1, 1024>}, {pipeline_mode = #tpu.pipeline_mode<synchronous>, transform_indices = @transform_5, window_bounds = array<i64: 1024, 128>}, {pipeline_mode = #tpu.pipeline_mode<synchronous>, transform_indices = @transform_6, window_bounds = array<i64: 1, 128>}, {transform_indices = @transform_7, window_bounds = array<i64: 16, 128>}]} {
    %c0 = arith.constant 0 : index
    %c0_0 = arith.constant 0 : index
    %0 = vector.load %arg1[%c0, %c0_0] : memref<16x3072xf32, #tpu.memory_space<vmem>>, vector<16x3072xf32>
    %1 = arith.truncf %0 : vector<16x3072xf32> to vector<16x3072xbf16>
    %c0_1 = arith.constant 0 : index
    %c0_2 = arith.constant 0 : index
    %2 = vector.load %arg2[%c0_1, %c0_2] : memref<3072x128xbf16, #tpu.memory_space<vmem>>, vector<3072x128xbf16>
    %cst = arith.constant dense<0.000000e+00> : vector<16x128xf32>
    %3 = tpu.matmul %1, %2, %cst {dimension_numbers = #tpu.dot_dimension_numbers<[1], [0], [0], [1], [0, 0, 1, 1], [], []>} : vector<16x3072xbf16>, vector<3072x128xbf16>, vector<16x128xf32> -> vector<16x128xf32>
    %c0_3 = arith.constant 0 : index
    %c0_4 = arith.constant 0 : index
    %4 = vector.load %arg3[%c0_3, %c0_4] : memref<1x128xf32, #tpu.memory_space<vmem>>, vector<1x128xf32>
    %5 = vector.broadcast %4 : vector<1x128xf32> to vector<16x128xf32>
    %6 = arith.addf %3, %5 : vector<16x128xf32>
    %cst_5 = arith.constant 0.000000e+00 : f32
    %7 = vector.broadcast %cst_5 : f32 to vector<16x128xf32>
    %8 = arith.maximumf %6, %7 : vector<16x128xf32>
    %9 = arith.truncf %8 : vector<16x128xf32> to vector<16x128xbf16>
    %c0_6 = arith.constant 0 : index
    %c0_7 = arith.constant 0 : index
    %10 = vector.load %arg4[%c0_6, %c0_7] : memref<128x1024xbf16, #tpu.memory_space<vmem>>, vector<128x1024xbf16>
    %cst_8 = arith.constant dense<0.000000e+00> : vector<16x1024xf32>
    %11 = tpu.matmul %9, %10, %cst_8 {dimension_numbers = #tpu.dot_dimension_numbers<[1], [0], [0], [1], [0, 0, 1, 1], [], []>} : vector<16x128xbf16>, vector<128x1024xbf16>, vector<16x1024xf32> -> vector<16x1024xf32>
    %c0_9 = arith.constant 0 : index
    %c0_10 = arith.constant 0 : index
    %12 = vector.load %arg5[%c0_9, %c0_10] : memref<1x1024xf32, #tpu.memory_space<vmem>>, vector<1x1024xf32>
    %13 = vector.broadcast %12 : vector<1x1024xf32> to vector<16x1024xf32>
    %14 = arith.addf %11, %13 : vector<16x1024xf32>
    %cst_11 = arith.constant 0.000000e+00 : f32
    %15 = vector.broadcast %cst_11 : f32 to vector<16x1024xf32>
    %16 = arith.maximumf %14, %15 : vector<16x1024xf32>
    %17 = arith.truncf %16 : vector<16x1024xf32> to vector<16x1024xbf16>
    %c0_12 = arith.constant 0 : index
    %c0_13 = arith.constant 0 : index
    %18 = vector.load %arg6[%c0_12, %c0_13] : memref<1024x128xbf16, #tpu.memory_space<vmem>>, vector<1024x128xbf16>
    %cst_14 = arith.constant dense<0.000000e+00> : vector<16x128xf32>
    %19 = tpu.matmul %17, %18, %cst_14 {dimension_numbers = #tpu.dot_dimension_numbers<[1], [0], [0], [1], [0, 0, 1, 1], [], []>} : vector<16x1024xbf16>, vector<1024x128xbf16>, vector<16x128xf32> -> vector<16x128xf32>
    %c0_15 = arith.constant 0 : index
    %c0_16 = arith.constant 0 : index
    %20 = vector.load %arg7[%c0_15, %c0_16] : memref<1x128xf32, #tpu.memory_space<vmem>>, vector<1x128xf32>
    %21 = vector.broadcast %20 : vector<1x128xf32> to vector<16x128xf32>
    %22 = arith.addf %19, %21 : vector<16x128xf32>
    %23 = arith.truncf %22 : vector<16x128xf32> to vector<16x128xbf16>
    %c0_17 = arith.constant 0 : index
    %c0_18 = arith.constant 0 : index
    %24 = vector.load %arg8[%c0_17, %c0_18] : memref<16x128xbf16, #tpu.memory_space<vmem>>, vector<16x128xbf16>
    tpu.vector_store %arg8[%c0_17, %c0_18], %23 {strides = array<i32>} : memref<16x128xbf16, #tpu.memory_space<vmem>>, vector<16x128xbf16>,
    return
  }
  func.func @transform_0(%arg0: i32) -> (i32, i32) {
    %c0_i32 = arith.constant 0 : i32
    %c0_i32_0 = arith.constant 0 : i32
    return %arg0, %c0_i32 : i32, i32
  }
  func.func @transform_1(%arg0: i32) -> (i32, i32) {
    %c0_i32 = arith.constant 0 : i32
    %c0_i32_0 = arith.constant 0 : i32
    %c0_i32_1 = arith.constant 0 : i32
    return %c0_i32, %c0_i32_0 : i32, i32
  }
  func.func @transform_2(%arg0: i32) -> (i32, i32) {
    %c0_i32 = arith.constant 0 : i32
    %c0_i32_0 = arith.constant 0 : i32
    %c0_i32_1 = arith.constant 0 : i32
    return %c0_i32, %c0_i32_0 : i32, i32
  }
  func.func @transform_3(%arg0: i32) -> (i32, i32) {
    %c0_i32 = arith.constant 0 : i32
    %c0_i32_0 = arith.constant 0 : i32
    %c0_i32_1 = arith.constant 0 : i32
    return %c0_i32, %c0_i32_0 : i32, i32
  }
  func.func @transform_4(%arg0: i32) -> (i32, i32) {
    %c0_i32 = arith.constant 0 : i32
    %c0_i32_0 = arith.constant 0 : i32
    %c0_i32_1 = arith.constant 0 : i32
    return %c0_i32, %c0_i32_0 : i32, i32
  }
  func.func @transform_5(%arg0: i32) -> (i32, i32) {
    %c0_i32 = arith.constant 0 : i32
    %c0_i32_0 = arith.constant 0 : i32
    %c0_i32_1 = arith.constant 0 : i32
    return %c0_i32, %c0_i32_0 : i32, i32
  }
  func.func @transform_6(%arg0: i32) -> (i32, i32) {
    %c0_i32 = arith.constant 0 : i32
    %c0_i32_0 = arith.constant 0 : i32
    %c0_i32_1 = arith.constant 0 : i32
    return %c0_i32, %c0_i32_0 : i32, i32
  }
  func.func @transform_7(%arg0: i32) -> (i32, i32) {
    %c0_i32 = arith.constant 0 : i32
    %c0_i32_0 = arith.constant 0 : i32
    return %arg0, %c0_i32 : i32, i32
  }
}

</mosaic_0001>

<bundles_post_ra>
// kernel: tpu_custom_call.1
= control target key start
LH: loop header
LB: loop body
LE: loop exit
PB: predicated region body
PF: predicated region fallthrough
CT: control target
= control target key end

     0   :  { %12 = vsyncpa [#allocation3], 0  ;;  %s5501_s0 = inlined_call_operand.hbm [shape: f32[2,3072], index: 0, kind: input, shape index: {}]   ;;  %s5502_s1 = inlined_call_operand.hbm [shape: bf16[3072,128], index: 1, kind: input, shape index: {}]   ;;  %s5503_s2 = inlined_call_operand.vmem [shape: f32[1,128], index: 2, kind: input, shape index: {}]   ;;  %s5504_s3 = inlined_call_operand.hbm [shape: bf16[128,1024], index: 3, kind: input, shape index: {}]   ;;  %s5505_s4 = inlined_call_operand.hbm [shape: f32[1,1024], index: 4, kind: input, shape index: {}]   ;;  %s5506_s5 = inlined_call_operand.hbm [shape: bf16[1024,128], index: 5, kind: input, shape index: {}]   ;;  %s5507_s6 = inlined_call_operand.vmem [shape: f32[1,128], index: 6, kind: input, shape index: {}]   ;;  %s5508_s7 = inlined_call_operand.hbm [shape: bf16[2,128], index: 7, kind: output, shape index: {}]  }
   0x1   :  { %13 = vsyncpa [#allocation6], 0 }
   0x2   :  { %14 = vsyncpa [#allocation9], 0 }
   0x3   :  { %15 = vsyncpa [#allocation4], 0  ;;  %s33_s26 = sshll.u32 %s5502_s1, 4  ;;  %s34_s26 = int_to_ptr.hbm [resolvable:$true] %s33_s26 }
   0x4   :  { %19 = vsyncadd [#allocation3], 5376  ;;  %s5258_s27 = smov [#allocation5]   ;;  %s62_s8 = sshll.u32 %s5505_s4, 4  ;;  %s63_s8 = int_to_ptr.hbm [resolvable:$true] %s62_s8 }
   0x5   :  { %s35_s28 = sshll.u32 %s5258_s27, 4  ;;  %s5259_s9 = smov 64   ;;  %s36_s28 = int_to_ptr.vmem [resolvable:$true] %s35_s28 }
   0x6   :  { %s5260_s10 = smov 4   ;;  %s5261_s11 = smov [#allocation8]  }
   0x7   :  { %41 = dma.hbm_to_vmem [thread:$0]  %s34_s26, 24576, %s36_s28, [#allocation6], %s5259_s9, %s5259_s9, %s5260_s10  }
   0x8   :  { %s64_s12 = sshll.u32 %s5261_s11, 4  ;;  %s20_s14 = sshll.u32 %s5501_s0, 4  ;;  %s65_s12 = int_to_ptr.vmem [resolvable:$true] %s64_s12  ;;  %s21_s14 = int_to_ptr.hbm [resolvable:$true] %s20_s14 }
   0x9   :  { %67 = dma.hbm_to_vmem [thread:$0]  %s63_s8, 128, %s65_s12, [#allocation9]  }
   0xa   :  { %s5262_s15 = smov [#allocation2]   ;;  %s48_s18 = sshll.u32 %s5504_s3, 4  ;;  %s49_s18 = int_to_ptr.hbm [resolvable:$true] %s48_s18 }
   0xb   :  { %s22_s16 = sshll.u32 %s5262_s15, 4  ;;  %s5263_s19 = smov 768   ;;  %s23_s16 = int_to_ptr.vmem [resolvable:$true] %s22_s16 }
   0xc   :  { %s5264_s20 = smov 48   ;;  %s5265_s21 = smov [#allocation7]  }
   0xd   :  { %28 = dma.hbm_to_vmem [thread:$0]  %s21_s14, 768, %s23_s16, [#allocation3], %s5263_s19, %s5263_s19, %s5264_s20  }
   0xe   :  { %s50_s22 = sshll.u32 %s5265_s21, 4  ;;  %s5266_s23 = smov 512   ;;  %s51_s22 = int_to_ptr.vmem [resolvable:$true] %s50_s22 }
   0xf   :  { %s5267_s24 = smov 32   ;;  %s72_s26 = sshll.u32 %s5506_s5, 4  ;;  %s73_s26 = int_to_ptr.hbm [resolvable:$true] %s72_s26 }
  0x10   :  { %56 = dma.hbm_to_vmem [thread:$0]  %s49_s18, 8192, %s51_s22, [#allocation6], %s5266_s23, %s5266_s23, %s5267_s24  }
  0x11   :  { %s5268_s27 = smov [#allocation10]  }
  0x12   :  { %s74_s28 = sshll.u32 %s5268_s27, 4  ;;  %s75_s28 = int_to_ptr.vmem [resolvable:$true] %s74_s28 }
  0x13   :  { %80 = dma.hbm_to_vmem [thread:$0]  %s73_s26, 8192, %s75_s28, [#allocation9], %s5259_s9, %s5259_s9, %s5260_s10  }
  0x14   :  { %5250 = dma.done.wait [#allocation3], 6144  }
  0x15   :  { %5251 = vsyncadd [#allocation3], 4294961152 }
  0x16   :  { %5252 = dma.done.wait [#allocation6], 32768  }
  0x17   :  { %5253 = vsyncadd [#allocation6], 4294934528 }
  0x18   :  { %5254 = dma.done.wait [#allocation9], 8320  }
  0x19   :  { %5255 = vsyncadd [#allocation9], 4294958976  ;;  %v4777_v0 = vld [vmem:[#allocation5 + $0x38] sm:$0xff]  ;;  %v4776_v4 = vld [vmem:[#allocation5 + $0x30] sm:$0xff]  ;;  %vm3425_vm0 = vcmask 1040384   ;;  %vm3429_vm1 = vcmask 1041409  }
  0x1a   :  { %v4785_v1 = vld [vmem:[#allocation5 + $0x78] sm:$0xff]  ;;  %1914 = vmatpush.bf16.msra.mxu0 %v4777_v0  ;;  %v4784_v5 = vld [vmem:[#allocation5 + $0x70] sm:$0xff]  ;;  %v4775_v8 = vld [vmem:[#allocation5 + $0x28] sm:$0xff]  ;;  %vm3433_vm2 = vcmask 1042434   ;;  %vm3437_vm3 = vcmask 1043459  }
  0x1b   :  { %v4793_v2 = vld [vmem:[#allocation5 + $0xb8] sm:$0xff]  ;;  %1928 = vmatpush.bf16.msra.mxu1 %v4785_v1  ;;  %v4792_v6 = vld [vmem:[#allocation5 + $0xb0] sm:$0xff]  ;;  %v4783_v9 = vld [vmem:[#allocation5 + $0x68] sm:$0xff] }
  0x1c   :  { %v4801_v3 = vld [vmem:[#allocation5 + $0xf8] sm:$0xff]  ;;  %1942 = vmatpush.bf16.msra.mxu2 %v4793_v2  ;;  %v4800_v7 = vld [vmem:[#allocation5 + $0xf0] sm:$0xff]  ;;  %v4791_v10 = vld [vmem:[#allocation5 + $0xa8] sm:$0xff] }
  0x1d   :  { %1956 = vmatpush.bf16.msra.mxu3 %v4801_v3  ;;  %v4799_v11 = vld [vmem:[#allocation5 + $0xe8] sm:$0xff]  ;;  %v4774_v12 = vld [vmem:[#allocation5 + $0x20] sm:$0xff]  ;;  %v4773_v16 = vld [vmem:[#allocation5 + $0x18] sm:$0xff] }
  0x1e   :  { %1915 = vmatpush.bf16.msra.mxu0 %v4776_v4  ;;  %v4782_v13 = vld [vmem:[#allocation5 + $0x60] sm:$0xff]  ;;  %v4781_v17 = vld [vmem:[#allocation5 + $0x58] sm:$0xff]  ;;  %v109_v21 = vld [vmem:[#allocation2 + $0x30] sm:$0xff] }
  0x1f   :  { %1929 = vmatpush.bf16.msra.mxu1 %v4784_v5  ;;  %v4790_v14 = vld [vmem:[#allocation5 + $0xa0] sm:$0xff]  ;;  %v4789_v18 = vld [vmem:[#allocation5 + $0x98] sm:$0xff]  ;;  %v4772_v22 = vld [vmem:[#allocation5 + $0x10] sm:$0xff]  ;;  %201 = vst [vmem:[#allocation1 + $0x1] ss:$4 sm:$0xff] %v109_v21 }
  0x20   :  { %1943 = vmatpush.bf16.msra.mxu2 %v4792_v6  ;;  %v4798_v15 = vld [vmem:[#allocation5 + $0xe0] sm:$0xff]  ;;  %v4797_v19 = vld [vmem:[#allocation5 + $0xd8] sm:$0xff]  ;;  %v4780_v23 = vld [vmem:[#allocation5 + $0x50] sm:$0xff] }
  0x21   :  { %1957 = vmatpush.bf16.msra.mxu3 %v4800_v7  ;;  %v103_v20 = vld [vmem:[#allocation2] sm:$0xff]  ;;  %v4788_v25 = vld [vmem:[#allocation5 + $0x90] sm:$0xff]  ;;  %v4771_v28 = vld [vmem:[#allocation5 + $0x8] sm:$0xff] }
  0x22   :  { %1916 = vmatpush.bf16.msra.mxu0 %v4775_v8  ;;  %199 = vst [vmem:[#allocation1] ss:$4 sm:$0xff] %v103_v20  ;;  %v115_v24 = vld [vmem:[#allocation2 + $0x60] sm:$0xff]  ;;  %v4796_v26 = vld [vmem:[#allocation5 + $0xd0] sm:$0xff]  ;;  %v4779_v29 = vld [vmem:[#allocation5 + $0x48] sm:$0xff] }
  0x23   :  { %1930 = vmatpush.bf16.msra.mxu1 %v4783_v9  ;;  %v121_v27 = vld [vmem:[#allocation2 + $0x90] sm:$0xff]  ;;  %203 = vst [vmem:[#allocation1 + $0x2] ss:$4 sm:$0xff] %v115_v24  ;;  %v104_v30 = vld [vmem:[#allocation2 + $0x8] sm:$0xff]  ;;  %v110_v31 = vld [vmem:[#allocation2 + $0x38] sm:$0xff] }
  0x24   :  { %1944 = vmatpush.bf16.msra.mxu2 %v4791_v10  ;;  %205 = vst [vmem:[#allocation1 + $0x3] ss:$4 sm:$0xff] %v121_v27  ;;  %v116_v32 = vld [vmem:[#allocation2 + $0x68] sm:$0xff]  ;;  %v122_v33 = vld [vmem:[#allocation2 + $0x98] sm:$0xff]  ;;  %v4770_v36 = vld [vmem:[#allocation5] sm:$0xff] }
  0x25   :  { %1958 = vmatpush.bf16.msra.mxu3 %v4799_v11  ;;  %207 = vst [vmem:[#allocation1 + $0x20] ss:$4 sm:$0xff] %v104_v30  ;;  %v4787_v34 = vld [vmem:[#allocation5 + $0x88] sm:$0xff]  ;;  %v4778_v37 = vld [vmem:[#allocation5 + $0x40] sm:$0xff]  ;;  %v4809_v40 = vld [vmem:[#allocation5 + $0x138] sm:$0xff] }
  0x26   :  { %1917 = vmatpush.bf16.msra.mxu0 %v4774_v12  ;;  %v4795_v35 = vld [vmem:[#allocation5 + $0xc8] sm:$0xff]  ;;  %209 = vst [vmem:[#allocation1 + $0x21] ss:$4 sm:$0xff] %v110_v31  ;;  %v4786_v38 = vld [vmem:[#allocation5 + $0x80] sm:$0xff]  ;;  %v4817_v41 = vld [vmem:[#allocation5 + $0x178] sm:$0xff] }
  0x27   :  { %1931 = vmatpush.bf16.msra.mxu1 %v4782_v13  ;;  %211 = vst [vmem:[#allocation1 + $0x22] ss:$4 sm:$0xff] %v116_v32  ;;  %v4794_v39 = vld [vmem:[#allocation5 + $0xc0] sm:$0xff]  ;;  %v105_v42 = vld [vmem:[#allocation2 + $0x10] sm:$0xff]  ;;  %v4825_v49 = vld [vmem:[#allocation5 + $0x1b8] sm:$0xff] }
  0x28   :  { %1945 = vmatpush.bf16.msra.mxu2 %v4790_v14  ;;  %213 = vst [vmem:[#allocation1 + $0x23] ss:$4 sm:$0xff] %v122_v33  ;;  %v111_v43 = vld [vmem:[#allocation2 + $0x40] sm:$0xff]  ;;  %v117_v44 = vld [vmem:[#allocation2 + $0x70] sm:$0xff]  ;;  %v4833_v50 = vld [vmem:[#allocation5 + $0x1f8] sm:$0xff] }
  0x29   :  { %1959 = vmatpush.bf16.msra.mxu3 %v4798_v15  ;;  %v123_v51 = vld [vmem:[#allocation2 + $0xa0] sm:$0xff]  ;;  %v4808_v52 = vld [vmem:[#allocation5 + $0x130] sm:$0xff]  ;;  %v4807_v56 = vld [vmem:[#allocation5 + $0x128] sm:$0xff] }
  0x2a   :  { %1918 = vmatpush.bf16.msra.mxu0 %v4773_v16  ;;  %v4816_v53 = vld [vmem:[#allocation5 + $0x170] sm:$0xff]  ;;  %v4815_v57 = vld [vmem:[#allocation5 + $0x168] sm:$0xff]  ;;  %v4806_v60 = vld [vmem:[#allocation5 + $0x120] sm:$0xff] }
  0x2b   :  { %1932 = vmatpush.bf16.msra.mxu1 %v4781_v17  ;;  %v5333_v45 = vld.sshfl [vmem:[#allocation1] sm:$0xff pattern:$0x73625140]  ;;  %v5335_v46 = vld.sshfl [vmem:[#allocation1 + $0x8] sm:$0xff pattern:$0x73625140] }
  0x2c   :  { %1946 = vmatpush.bf16.msra.mxu2 %v4789_v18  ;;  %v5337_v47 = vld.sshfl [vmem:[#allocation1 + $0x10] sm:$0xff pattern:$0x73625140]  ;;  %v5339_v48 = vld.sshfl [vmem:[#allocation1 + $0x18] sm:$0xff pattern:$0x73625140] }
  0x2d   :  { %1960 = vmatpush.bf16.msra.mxu3 %v4797_v19  ;;  %222 = vst [vmem:[#allocation1] ss:$4 sm:$0xff] %v105_v42  ;;  %v4824_v54 = vld [vmem:[#allocation5 + $0x1b0] sm:$0xff]  ;;  %v4823_v58 = vld [vmem:[#allocation5 + $0x1a8] sm:$0xff]  ;;  %v4814_v61 = vld [vmem:[#allocation5 + $0x160] sm:$0xff] }
  0x2e   :  { %1919 = vmatpush.bf16.msra.mxu0 %v4772_v22  ;;  %223 = vst [vmem:[#allocation1 + $0x1] ss:$4 sm:$0xff] %v111_v43  ;;  %v4832_v55 = vld [vmem:[#allocation5 + $0x1f0] sm:$0xff]  ;;  %v4831_v59 = vld [vmem:[#allocation5 + $0x1e8] sm:$0xff]  ;;  %v107_v62 = vld [vmem:[#allocation2 + $0x20] sm:$0xff] }
  0x2f   :  { %1933 = vmatpush.bf16.msra.mxu1 %v4780_v23  ;;  %224 = vst [vmem:[#allocation1 + $0x2] ss:$4 sm:$0xff] %v117_v44  ;;  %v113_v63 = vld [vmem:[#allocation2 + $0x50] sm:$0xff]  ;;  %v119_v0 = vld [vmem:[#allocation2 + $0x80] sm:$0xff]  ;;  %v106_v8 = vld [vmem:[#allocation2 + $0x18] sm:$0xff] }
  0x30   :  { %1947 = vmatpush.bf16.msra.mxu2 %v4788_v25  ;;  %225 = vst [vmem:[#allocation1 + $0x3] ss:$4 sm:$0xff] %v123_v51  ;;  %v4822_v1 = vld [vmem:[#allocation5 + $0x1a0] sm:$0xff]  ;;  %v125_v7 = vld [vmem:[#allocation2 + $0xb0] sm:$0xff]  ;;  %v112_v9 = vld [vmem:[#allocation2 + $0x48] sm:$0xff] }
  0x31   :  { %1961 = vmatpush.bf16.msra.mxu3 %v4796_v26  ;;  %v4830_v6 = vld [vmem:[#allocation5 + $0x1e0] sm:$0xff]  ;;  %v5349_v10 = vld.sshfl [vmem:[#allocation1 + $0x20] sm:$0xff pattern:$0x73625140]  ;;  %v124_v19 = vld [vmem:[#allocation2 + $0xa8] sm:$0xff] }
  0x32   :  { %1920 = vmatpush.bf16.msra.mxu0 %v4771_v28  ;;  %v4805_v11 = vld [vmem:[#allocation5 + $0x118] sm:$0xff]  ;;  %v5351_v13 = vld.sshfl [vmem:[#allocation1 + $0x28] sm:$0xff pattern:$0x73625140]  ;;  %v4804_v21 = vld [vmem:[#allocation5 + $0x110] sm:$0xff] }
  0x33   :  { %1934 = vmatpush.bf16.msra.mxu1 %v4779_v29  ;;  %v118_v12 = vld [vmem:[#allocation2 + $0x78] sm:$0xff]  ;;  %v5353_v15 = vld.sshfl [vmem:[#allocation1 + $0x30] sm:$0xff pattern:$0x73625140]  ;;  %v127_v20 = vld [vmem:[#allocation2 + $0xc0] sm:$0xff] }
  0x34   :  { %1948 = vmatpush.bf16.msra.mxu2 %v4787_v34  ;;  %v4813_v14 = vld [vmem:[#allocation5 + $0x158] sm:$0xff]  ;;  %v5355_v18 = vld.sshfl [vmem:[#allocation1 + $0x38] sm:$0xff pattern:$0x73625140]  ;;  %v139_v26 = vld [vmem:[#allocation2 + $0x120] sm:$0xff] }
  0x35   :  { %1962 = vmatpush.bf16.msra.mxu3 %v4795_v35  ;;  %v4821_v16 = vld [vmem:[#allocation5 + $0x198] sm:$0xff]  ;;  %226 = vst [vmem:[#allocation1 + $0x20] ss:$4 sm:$0xff] %v106_v8  ;;  %v4812_v22 = vld [vmem:[#allocation5 + $0x150] sm:$0xff]  ;;  %v4803_v27 = vld [vmem:[#allocation5 + $0x108] sm:$0xff] }
  0x36   :  { %1921 = vmatpush.bf16.msra.mxu0 %v4770_v36  ;;  %v4829_v17 = vld [vmem:[#allocation5 + $0x1d8] sm:$0xff]  ;;  %227 = vst [vmem:[#allocation1 + $0x21] ss:$4 sm:$0xff] %v112_v9  ;;  %v133_v23 = vld [vmem:[#allocation2 + $0xf0] sm:$0xff]  ;;  %v4811_v28 = vld [vmem:[#allocation5 + $0x148] sm:$0xff] }
  0x37   :  { %1935 = vmatpush.bf16.msra.mxu1 %v4778_v37  ;;  %v5341_v2 = vld.sshfl [vmem:[#allocation1] sm:$0xff pattern:$0x73625140]  ;;  %v5343_v3 = vld.sshfl [vmem:[#allocation1 + $0x8] sm:$0xff pattern:$0x73625140] }
  0x38   :  { %1949 = vmatpush.bf16.msra.mxu2 %v4786_v38  ;;  %v5345_v4 = vld.sshfl [vmem:[#allocation1 + $0x10] sm:$0xff pattern:$0x73625140]  ;;  %v5347_v5 = vld.sshfl [vmem:[#allocation1 + $0x18] sm:$0xff pattern:$0x73625140] }
  0x39   :  { %1963 = vmatpush.bf16.msra.mxu3 %v4794_v39  ;;  %238 = vst [vmem:[#allocation1] ss:$4 sm:$0xff] %v107_v62  ;;  %v4820_v24 = vld [vmem:[#allocation5 + $0x190] sm:$0xff]  ;;  %v4819_v34 = vld [vmem:[#allocation5 + $0x188] sm:$0xff]  ;;  %v4802_v37 = vld [vmem:[#allocation5 + $0x100] sm:$0xff] }
  0x3a   :  { %1970 = vmatpush.bf16.msrb.mxu0 %v4809_v40  ;;  %239 = vst [vmem:[#allocation1 + $0x1] ss:$4 sm:$0xff] %v113_v63  ;;  %v4828_v25 = vld [vmem:[#allocation5 + $0x1d0] sm:$0xff]  ;;  %v4827_v35 = vld [vmem:[#allocation5 + $0x1c8] sm:$0xff]  ;;  %v4810_v38 = vld [vmem:[#allocation5 + $0x140] sm:$0xff] }
  0x3b   :  { %1984 = vmatpush.bf16.msrb.mxu1 %v4817_v41  ;;  %240 = vst [vmem:[#allocation1 + $0x2] ss:$4 sm:$0xff] %v119_v0  ;;  %v145_v33 = vld [vmem:[#allocation2 + $0x150] sm:$0xff]  ;;  %v108_v36 = vld [vmem:[#allocation2 + $0x28] sm:$0xff]  ;;  %v4818_v39 = vld [vmem:[#allocation5 + $0x180] sm:$0xff] }
  0x3c   :  { %1998 = vmatpush.bf16.msrb.mxu2 %v4825_v49  ;;  %241 = vst [vmem:[#allocation1 + $0x3] ss:$4 sm:$0xff] %v125_v7  ;;  %v114_v40 = vld [vmem:[#allocation2 + $0x58] sm:$0xff]  ;;  %v4826_v41 = vld [vmem:[#allocation5 + $0x1c0] sm:$0xff]  ;;  %v120_v49 = vld [vmem:[#allocation2 + $0x88] sm:$0xff] }
  0x3d   :  { %2012 = vmatpush.bf16.msrb.mxu3 %v4833_v50  ;;  %228 = vst [vmem:[#allocation1 + $0x22] ss:$4 sm:$0xff] %v118_v12  ;;  %v126_v51 = vld [vmem:[#allocation2 + $0xb8] sm:$0xff]  ;;  %v128_v0 = vld [vmem:[#allocation2 + $0xc8] sm:$0xff]  ;;  %v4848_v7 = vld [vmem:[#allocation5 + $0x270] sm:$0xff] }
  0x3e   :  { %1971 = vmatpush.bf16.msrb.mxu0 %v4808_v52  ;;  %229 = vst [vmem:[#allocation1 + $0x23] ss:$4 sm:$0xff] %v124_v19  ;;  %v4841_v52 = vld [vmem:[#allocation5 + $0x238] sm:$0xff]  ;;  %v4864_v8 = vld [vmem:[#allocation5 + $0x2f0] sm:$0xff]  ;;  %v4855_v19 = vld [vmem:[#allocation5 + $0x2a8] sm:$0xff] }
  0x3f   :  { %1985 = vmatpush.bf16.msrb.mxu1 %v4816_v53  ;;  %v4849_v53 = vld [vmem:[#allocation5 + $0x278] sm:$0xff] }
  0x40   :  { %1999 = vmatpush.bf16.msrb.mxu2 %v4824_v54  ;;  %v4857_v62 = vld [vmem:[#allocation5 + $0x2b8] sm:$0xff] }
  0x41   :  { %2013 = vmatpush.bf16.msrb.mxu3 %v4832_v55  ;;  %v4865_v63 = vld [vmem:[#allocation5 + $0x2f8] sm:$0xff] }
  0x42   :  { %1972 = vmatpush.bf16.msrb.mxu0 %v4807_v56  ;;  %v146_v12 = vld [vmem:[#allocation2 + $0x158] sm:$0xff] }
  0x43   :  { %1986 = vmatpush.bf16.msrb.mxu1 %v4815_v57  ;;  %v5357_v29 = vld.sshfl [vmem:[#allocation1] sm:$0xff pattern:$0x73625140]  ;;  %v5359_v30 = vld.sshfl [vmem:[#allocation1 + $0x8] sm:$0xff pattern:$0x73625140] }
  0x44   :  { %2000 = vmatpush.bf16.msrb.mxu2 %v4823_v58  ;;  %v5361_v31 = vld.sshfl [vmem:[#allocation1 + $0x10] sm:$0xff pattern:$0x73625140]  ;;  %v5363_v32 = vld.sshfl [vmem:[#allocation1 + $0x18] sm:$0xff pattern:$0x73625140] }
  0x45   :  { %2014 = vmatpush.bf16.msrb.mxu3 %v4831_v59  ;;  %254 = vst [vmem:[#allocation1] ss:$4 sm:$0xff] %v127_v20  ;;  %v5365_v42 = vld.sshfl [vmem:[#allocation1 + $0x20] sm:$0xff pattern:$0x73625140]  ;;  %v4863_v20 = vld [vmem:[#allocation5 + $0x2e8] sm:$0xff] }
  0x46   :  { %1973 = vmatpush.bf16.msrb.mxu0 %v4806_v60  ;;  %255 = vst [vmem:[#allocation1 + $0x1] ss:$4 sm:$0xff] %v133_v23  ;;  %v5367_v43 = vld.sshfl [vmem:[#allocation1 + $0x28] sm:$0xff pattern:$0x73625140] }
  0x47   :  { %1987 = vmatpush.bf16.msrb.mxu1 %v4814_v61  ;;  %256 = vst [vmem:[#allocation1 + $0x2] ss:$4 sm:$0xff] %v139_v26  ;;  %v5369_v44 = vld.sshfl [vmem:[#allocation1 + $0x30] sm:$0xff pattern:$0x73625140]  ;;  %v147_v23 = vld [vmem:[#allocation2 + $0x160] sm:$0xff] }
  0x48   :  { %2001 = vmatpush.bf16.msrb.mxu2 %v4822_v1  ;;  %257 = vst [vmem:[#allocation1 + $0x3] ss:$4 sm:$0xff] %v145_v33  ;;  %v5371_v50 = vld.sshfl [vmem:[#allocation1 + $0x38] sm:$0xff pattern:$0x73625140]  ;;  %v134_v1 = vld [vmem:[#allocation2 + $0xf8] sm:$0xff] }
  0x49   :  { %2015 = vmatpush.bf16.msrb.mxu3 %v4830_v6  ;;  %242 = vst [vmem:[#allocation1 + $0x20] ss:$4 sm:$0xff] %v108_v36  ;;  %v4840_v6 = vld [vmem:[#allocation5 + $0x230] sm:$0xff]  ;;  %v4854_v26 = vld [vmem:[#allocation5 + $0x2a0] sm:$0xff]  ;;  %v4845_v33 = vld [vmem:[#allocation5 + $0x258] sm:$0xff] }
  0x4a   :  { %1974 = vmatpush.bf16.msrb.mxu0 %v4805_v11  ;;  %243 = vst [vmem:[#allocation1 + $0x21] ss:$4 sm:$0xff] %v114_v40 }
  0x4b   :  { %1988 = vmatpush.bf16.msrb.mxu1 %v4813_v14  ;;  %244 = vst [vmem:[#allocation1 + $0x22] ss:$4 sm:$0xff] %v120_v49  ;;  %v4839_v14 = vld [vmem:[#allocation5 + $0x228] sm:$0xff]  ;;  %v4853_v49 = vld [vmem:[#allocation5 + $0x298] sm:$0xff] }
  0x4c   :  { %2002 = vmatpush.bf16.msrb.mxu2 %v4821_v16  ;;  %245 = vst [vmem:[#allocation1 + $0x23] ss:$4 sm:$0xff] %v126_v51  ;;  %v4847_v16 = vld [vmem:[#allocation5 + $0x268] sm:$0xff]  ;;  %v4861_v51 = vld [vmem:[#allocation5 + $0x2d8] sm:$0xff] }
  0x4d   :  { %2016 = vmatpush.bf16.msrb.mxu3 %v4829_v17  ;;  %v129_v17 = vld [vmem:[#allocation2 + $0xd0] sm:$0xff] }
  0x4e   :  { %1975 = vmatpush.bf16.msrb.mxu0 %v4804_v21  ;;  %v135_v21 = vld [vmem:[#allocation2 + $0x100] sm:$0xff] }
  0x4f   :  { %1989 = vmatpush.bf16.msrb.mxu1 %v4812_v22  ;;  %v262_v54 = vld.sshfl [vmem:[#allocation1] sm:$0xff pattern:$0x73625140]  ;;  %v264_v55 = vld.sshfl [vmem:[#allocation1 + $0x10] sm:$0xff pattern:$0x73625140] }
  0x50   :  { %2003 = vmatpush.bf16.msrb.mxu2 %v4820_v24  ;;  %v350_v56 = vpack.c.bf16 %v262_v54, %v5333_v45  ;;  %v352_v57 = vpack.c.bf16 %v264_v55, %v5337_v47  ;;  %v263_v58 = vld.sshfl [vmem:[#allocation1 + $0x8] sm:$0xff pattern:$0x73625140]  ;;  %v265_v59 = vld.sshfl [vmem:[#allocation1 + $0x18] sm:$0xff pattern:$0x73625140] }
  0x51   :  { %2017 = vmatpush.bf16.msrb.mxu3 %v4828_v25  ;;  %v351_v60 = vpack.c.bf16 %v263_v58, %v5335_v46  ;;  %v353_v61 = vpack.c.bf16 %v265_v59, %v5339_v48  ;;  %v140_v45 = vld [vmem:[#allocation2 + $0x128] sm:$0xff]  ;;  %v4856_v47 = vld [vmem:[#allocation5 + $0x2b0] sm:$0xff]  ;;  %270 = vst [vmem:[#allocation1] ss:$4 sm:$0xff] %v129_v17  ;;  %v4838_v24 = vld [vmem:[#allocation5 + $0x220] sm:$0xff] }
  0x52   :  { %1976 = vmatpush.bf16.msrb.mxu0 %v4803_v27  ;;  %1950 = vmatmul.bf16.vlgmr.msra.gmra.mxu2 %v352_v57  ;;  %v141_v22 = vld [vmem:[#allocation2 + $0x130] sm:$0xff]  ;;  %v4846_v25 = vld [vmem:[#allocation5 + $0x260] sm:$0xff]  ;;  %271 = vst [vmem:[#allocation1 + $0x1] ss:$4 sm:$0xff] %v135_v21  ;;  %v4835_v54 = vld [vmem:[#allocation5 + $0x208] sm:$0xff] }
  0x53   :  { %1990 = vmatpush.bf16.msrb.mxu1 %v4811_v28  ;;  %1922 = vmatmul.bf16.vlgmr.msra.gmra.mxu0 %v350_v56  ;;  %v5377_v46 = vld.sshfl [vmem:[#allocation1 + $0x20] sm:$0xff pattern:$0x73625140]  ;;  %v5379_v48 = vld.sshfl [vmem:[#allocation1 + $0x28] sm:$0xff pattern:$0x73625140] }
  0x54   :  { %2004 = vmatpush.bf16.msrb.mxu2 %v4819_v34  ;;  %1936 = vmatmul.bf16.vlgmr.msra.gmra.mxu1 %v351_v60  ;;  %v5381_v9 = vld.sshfl [vmem:[#allocation1 + $0x30] sm:$0xff pattern:$0x73625140]  ;;  %v5383_v11 = vld.sshfl [vmem:[#allocation1 + $0x38] sm:$0xff pattern:$0x73625140] }
  0x55   :  { %2018 = vmatpush.bf16.msrb.mxu3 %v4827_v35  ;;  %258 = vst [vmem:[#allocation1 + $0x20] ss:$4 sm:$0xff] %v128_v0  ;;  %v4862_v27 = vld [vmem:[#allocation5 + $0x2e0] sm:$0xff]  ;;  %v4837_v28 = vld [vmem:[#allocation5 + $0x218] sm:$0xff]  ;;  %v4859_v55 = vld [vmem:[#allocation5 + $0x2c8] sm:$0xff] }
  0x56   :  { %1977 = vmatpush.bf16.msrb.mxu0 %v4802_v37  ;;  %1964 = vmatmul.bf16.vlgmr.msra.gmra.mxu3 %v353_v61  ;;  %259 = vst [vmem:[#allocation1 + $0x21] ss:$4 sm:$0xff] %v134_v1  ;;  %v4834_v56 = vld [vmem:[#allocation5 + $0x200] sm:$0xff]  ;;  %v4873_v60 = vld [vmem:[#allocation5 + $0x338] sm:$0xff]  ;;  %v136_v17 = vld [vmem:[#allocation2 + $0x108] sm:$0xff] }
  0x57   :  { %1991 = vmatpush.bf16.msrb.mxu1 %v4810_v38  ;;  %260 = vst [vmem:[#allocation1 + $0x22] ss:$4 sm:$0xff] %v140_v45  ;;  %v4842_v57 = vld [vmem:[#allocation5 + $0x240] sm:$0xff]  ;;  %v4881_v61 = vld [vmem:[#allocation5 + $0x378] sm:$0xff]  ;;  %v148_v21 = vld [vmem:[#allocation2 + $0x168] sm:$0xff] }
  0x58   :  { %2005 = vmatpush.bf16.msrb.mxu2 %v4818_v39  ;;  %261 = vst [vmem:[#allocation1 + $0x23] ss:$4 sm:$0xff] %v146_v12  ;;  %v4850_v58 = vld [vmem:[#allocation5 + $0x280] sm:$0xff]  ;;  %v4897_v45 = vld [vmem:[#allocation5 + $0x3f8] sm:$0xff] }
  0x59   :  { %2019 = vmatpush.bf16.msrb.mxu3 %v4826_v41  ;;  %272 = vst [vmem:[#allocation1 + $0x2] ss:$4 sm:$0xff] %v141_v22  ;;  %v4858_v59 = vld [vmem:[#allocation5 + $0x2c0] sm:$0xff]  ;;  %v4896_v22 = vld [vmem:[#allocation5 + $0x3f0] sm:$0xff] }
  0x5a   :  { %2026 = vmatpush.bf16.msra.mxu0 %v4841_v52  ;;  %273 = vst [vmem:[#allocation1 + $0x3] ss:$4 sm:$0xff] %v147_v23  ;;  %v4836_v52 = vld [vmem:[#allocation5 + $0x210] sm:$0xff]  ;;  %v4895_v23 = vld [vmem:[#allocation5 + $0x3e8] sm:$0xff] }
  0x5b   :  { %2040 = vmatpush.bf16.msra.mxu1 %v4849_v53  ;;  %v4844_v53 = vld [vmem:[#allocation5 + $0x250] sm:$0xff] }
  0x5c   :  { %2054 = vmatpush.bf16.msra.mxu2 %v4857_v62 }
  0x5d   :  { %2068 = vmatpush.bf16.msra.mxu3 %v4865_v63 }
  0x5e   :  { %2027 = vmatpush.bf16.msra.mxu0 %v4840_v6  ;;  %v4889_v6 = vld [vmem:[#allocation5 + $0x3b8] sm:$0xff] }
  0x5f   :  { %2041 = vmatpush.bf16.msra.mxu1 %v4848_v7  ;;  %v266_v34 = vld.sshfl [vmem:[#allocation1 + $0x20] sm:$0xff pattern:$0x73625140]  ;;  %v268_v35 = vld.sshfl [vmem:[#allocation1 + $0x30] sm:$0xff pattern:$0x73625140] }
  0x60   :  { %2055 = vmatpush.bf16.msra.mxu2 %v4856_v47  ;;  %v354_v36 = vpack.c.bf16 %v266_v34, %v5349_v10  ;;  %v356_v37 = vpack.c.bf16 %v268_v35, %v5353_v15  ;;  %v267_v38 = vld.sshfl [vmem:[#allocation1 + $0x28] sm:$0xff pattern:$0x73625140]  ;;  %v269_v39 = vld.sshfl [vmem:[#allocation1 + $0x38] sm:$0xff pattern:$0x73625140] }
  0x61   :  { %2069 = vmatpush.bf16.msra.mxu3 %v4864_v8  ;;  %v355_v40 = vpack.c.bf16 %v267_v38, %v5351_v13  ;;  %v357_v41 = vpack.c.bf16 %v269_v39, %v5355_v18  ;;  %v4852_v10 = vld [vmem:[#allocation5 + $0x290] sm:$0xff]  ;;  %v4843_v13 = vld [vmem:[#allocation5 + $0x248] sm:$0xff]  ;;  %v278_v62 = vld.sshfl [vmem:[#allocation1] sm:$0xff pattern:$0x73625140] }
  0x62   :  { %2028 = vmatpush.bf16.msra.mxu0 %v4839_v14  ;;  %2006 = vmatmul.bf16.vlgmr.msrb.gmra.mxu2 %v356_v37  ;;  %v4860_v15 = vld [vmem:[#allocation5 + $0x2d0] sm:$0xff]  ;;  %v4851_v18 = vld [vmem:[#allocation5 + $0x288] sm:$0xff]  ;;  %v279_v0 = vld.sshfl [vmem:[#allocation1 + $0x8] sm:$0xff pattern:$0x73625140]  ;;  %v358_v7 = vpack.c.bf16 %v278_v62, %v5341_v2 }
  0x63   :  { %2042 = vmatpush.bf16.msra.mxu1 %v4847_v16  ;;  %1978 = vmatmul.bf16.vlgmr.msrb.gmra.mxu0 %v354_v36  ;;  %v280_v63 = vld.sshfl [vmem:[#allocation1 + $0x10] sm:$0xff pattern:$0x73625140]  ;;  %v281_v1 = vld.sshfl [vmem:[#allocation1 + $0x18] sm:$0xff pattern:$0x73625140]  ;;  %v359_v8 = vpack.c.bf16 %v279_v0, %v5343_v3 }
  0x64   :  { %2056 = vmatpush.bf16.msra.mxu2 %v4855_v19  ;;  %1992 = vmatmul.bf16.vlgmr.msrb.gmra.mxu1 %v355_v40  ;;  %v360_v47 = vpack.c.bf16 %v280_v63, %v5345_v4  ;;  %v361_v12 = vpack.c.bf16 %v281_v1, %v5347_v5  ;;  %v4872_v14 = vld [vmem:[#allocation5 + $0x330] sm:$0xff]  ;;  %v130_v16 = vld [vmem:[#allocation2 + $0xd8] sm:$0xff]  ;;  %275 = vst [vmem:[#allocation1 + $0x21] ss:$4 sm:$0xff] %v136_v17  ;;  %v4871_v3 = vld [vmem:[#allocation5 + $0x328] sm:$0xff] }
  0x65   :  { %2070 = vmatpush.bf16.msra.mxu3 %v4863_v20  ;;  %v4880_v19 = vld [vmem:[#allocation5 + $0x370] sm:$0xff]  ;;  %v142_v20 = vld [vmem:[#allocation2 + $0x138] sm:$0xff]  ;;  %274 = vst [vmem:[#allocation1 + $0x20] ss:$4 sm:$0xff] %v130_v16  ;;  %v4879_v4 = vld [vmem:[#allocation5 + $0x368] sm:$0xff] }
  0x66   :  { %2029 = vmatpush.bf16.msra.mxu0 %v4838_v24  ;;  %2020 = vmatmul.bf16.vlgmr.msrb.gmra.mxu3 %v357_v41  ;;  %v4888_v2 = vld [vmem:[#allocation5 + $0x3b0] sm:$0xff]  ;;  %276 = vst [vmem:[#allocation1 + $0x22] ss:$4 sm:$0xff] %v142_v20  ;;  %v4887_v5 = vld [vmem:[#allocation5 + $0x3a8] sm:$0xff]  ;;  %v4870_v24 = vld [vmem:[#allocation5 + $0x320] sm:$0xff] }
  0x67   :  { %2043 = vmatpush.bf16.msra.mxu1 %v4846_v25  ;;  %277 = vst [vmem:[#allocation1 + $0x23] ss:$4 sm:$0xff] %v148_v21  ;;  %v4878_v25 = vld [vmem:[#allocation5 + $0x360] sm:$0xff]  ;;  %v4885_v34 = vld [vmem:[#allocation5 + $0x398] sm:$0xff]  ;;  %v4868_v36 = vld [vmem:[#allocation5 + $0x310] sm:$0xff] }
  0x68   :  { %2057 = vmatpush.bf16.msra.mxu2 %v4854_v26  ;;  %v4886_v26 = vld [vmem:[#allocation5 + $0x3a0] sm:$0xff]  ;;  %v4893_v35 = vld [vmem:[#allocation5 + $0x3d8] sm:$0xff]  ;;  %v4876_v37 = vld [vmem:[#allocation5 + $0x350] sm:$0xff] }
  0x69   :  { %2071 = vmatpush.bf16.msra.mxu3 %v4862_v27  ;;  %v4894_v27 = vld [vmem:[#allocation5 + $0x3e0] sm:$0xff]  ;;  %v4884_v38 = vld [vmem:[#allocation5 + $0x390] sm:$0xff]  ;;  %v4867_v40 = vld [vmem:[#allocation5 + $0x308] sm:$0xff] }
  0x6a   :  { %2030 = vmatpush.bf16.msra.mxu0 %v4837_v28  ;;  %v4869_v28 = vld [vmem:[#allocation5 + $0x318] sm:$0xff]  ;;  %v4892_v39 = vld [vmem:[#allocation5 + $0x3d0] sm:$0xff]  ;;  %v4875_v41 = vld [vmem:[#allocation5 + $0x348] sm:$0xff] }
  0x6b   :  { %2044 = vmatpush.bf16.msra.mxu1 %v4845_v33  ;;  %v4877_v33 = vld [vmem:[#allocation5 + $0x358] sm:$0xff]  ;;  %v131_v62 = vld [vmem:[#allocation2 + $0xe0] sm:$0xff]  ;;  %v137_v1 = vld [vmem:[#allocation2 + $0x110] sm:$0xff] }
  0x6c   :  { %2058 = vmatpush.bf16.msra.mxu2 %v4853_v49  ;;  %v4883_v49 = vld [vmem:[#allocation5 + $0x388] sm:$0xff]  ;;  %286 = vst [vmem:[#allocation1] ss:$4 sm:$0xff] %v131_v62  ;;  %v4910_v16 = vld [vmem:[#allocation5 + $0x460] sm:$0xff]  ;;  %v4901_v20 = vld [vmem:[#allocation5 + $0x418] sm:$0xff] }
  0x6d   :  { %2072 = vmatpush.bf16.msra.mxu3 %v4861_v51  ;;  %v4891_v51 = vld [vmem:[#allocation5 + $0x3c8] sm:$0xff]  ;;  %287 = vst [vmem:[#allocation1 + $0x1] ss:$4 sm:$0xff] %v137_v1  ;;  %v4918_v17 = vld [vmem:[#allocation5 + $0x4a0] sm:$0xff]  ;;  %v4909_v21 = vld [vmem:[#allocation5 + $0x458] sm:$0xff] }
  0x6e   :  { %2031 = vmatpush.bf16.msra.mxu0 %v4836_v52  ;;  %v4866_v52 = vld [vmem:[#allocation5 + $0x300] sm:$0xff]  ;;  %v4941_v1 = vld [vmem:[#allocation5 + $0x558] sm:$0xff] }
  0x6f   :  { %2045 = vmatpush.bf16.msra.mxu1 %v4844_v53  ;;  %v4874_v53 = vld [vmem:[#allocation5 + $0x340] sm:$0xff] }
  0x70   :  { %2059 = vmatpush.bf16.msra.mxu2 %v4852_v10  ;;  %v4882_v10 = vld [vmem:[#allocation5 + $0x380] sm:$0xff] }
  0x71   :  { %2073 = vmatpush.bf16.msra.mxu3 %v4860_v15  ;;  %v4890_v15 = vld [vmem:[#allocation5 + $0x3c0] sm:$0xff] }
  0x72   :  { %2032 = vmatpush.bf16.msra.mxu0 %v4835_v54  ;;  %v4905_v54 = vld [vmem:[#allocation5 + $0x438] sm:$0xff]  ;;  %v4950_v62 = vld [vmem:[#allocation5 + $0x5a0] sm:$0xff] }
  0x73   :  { %2046 = vmatpush.bf16.msra.mxu1 %v4843_v13  ;;  %v4913_v13 = vld [vmem:[#allocation5 + $0x478] sm:$0xff] }
  0x74   :  { %2060 = vmatpush.bf16.msra.mxu2 %v4851_v18  ;;  %v282_v18 = vld.sshfl [vmem:[#allocation1 + $0x20] sm:$0xff pattern:$0x73625140] }
  0x75   :  { %2074 = vmatpush.bf16.msra.mxu3 %v4859_v55  ;;  %v284_v55 = vld.sshfl [vmem:[#allocation1 + $0x30] sm:$0xff pattern:$0x73625140] }
  0x76   :  { %2033 = vmatpush.bf16.msra.mxu0 %v4834_v56  ;;  %v283_v56 = vld.sshfl [vmem:[#allocation1 + $0x28] sm:$0xff pattern:$0x73625140] }
  0x77   :  { %2047 = vmatpush.bf16.msra.mxu1 %v4842_v57  ;;  %v285_v57 = vld.sshfl [vmem:[#allocation1 + $0x38] sm:$0xff pattern:$0x73625140]  ;;  %v363_v63 = vpack.c.bf16 %v283_v56, %v5367_v43  ;;  %v4903_v43 = vld [vmem:[#allocation5 + $0x428] sm:$0xff] }
  0x78   :  { %2061 = vmatpush.bf16.msra.mxu2 %v4850_v58  ;;  %v4921_v58 = vld [vmem:[#allocation5 + $0x4b8] sm:$0xff]  ;;  %v365_v0 = vpack.c.bf16 %v285_v57, %v5371_v50  ;;  %v4911_v50 = vld [vmem:[#allocation5 + $0x468] sm:$0xff]  ;;  %v4936_v56 = vld [vmem:[#allocation5 + $0x530] sm:$0xff] }
  0x79   :  { %2075 = vmatpush.bf16.msra.mxu3 %v4858_v59  ;;  %2034 = vmatmul.bf16.vlgmr.msra.gmra.mxu0 %v358_v7  ;;  %v4929_v59 = vld [vmem:[#allocation5 + $0x4f8] sm:$0xff]  ;;  %v4912_v7 = vld [vmem:[#allocation5 + $0x470] sm:$0xff] }
  0x7a   :  { %2082 = vmatpush.bf16.msrb.mxu0 %v4873_v60  ;;  %2048 = vmatmul.bf16.vlgmr.msra.gmra.mxu1 %v359_v8  ;;  %v362_v60 = vpack.c.bf16 %v282_v18, %v5365_v42  ;;  %v4920_v42 = vld [vmem:[#allocation5 + $0x4b0] sm:$0xff]  ;;  %v4919_v8 = vld [vmem:[#allocation5 + $0x4a8] sm:$0xff] }
  0x7b   :  { %2096 = vmatpush.bf16.msrb.mxu1 %v4881_v61  ;;  %2062 = vmatmul.bf16.vlgmr.msra.gmra.mxu2 %v360_v47  ;;  %v364_v61 = vpack.c.bf16 %v284_v55, %v5369_v44  ;;  %v149_v47 = vld [vmem:[#allocation2 + $0x170] sm:$0xff] }
  0x7c   :  { %2110 = vmatpush.bf16.msrb.mxu2 %v4889_v6  ;;  %2076 = vmatmul.bf16.vlgmr.msra.gmra.mxu3 %v361_v12  ;;  %v143_v6 = vld [vmem:[#allocation2 + $0x140] sm:$0xff]  ;;  %v4928_v44 = vld [vmem:[#allocation5 + $0x4f0] sm:$0xff]  ;;  %289 = vst [vmem:[#allocation1 + $0x3] ss:$4 sm:$0xff] %v149_v47  ;;  %v4927_v12 = vld [vmem:[#allocation5 + $0x4e8] sm:$0xff] }
  0x7d   :  { %2124 = vmatpush.bf16.msrb.mxu3 %v4897_v45  ;;  %v4904_v45 = vld [vmem:[#allocation5 + $0x430] sm:$0xff]  ;;  %288 = vst [vmem:[#allocation1 + $0x2] ss:$4 sm:$0xff] %v143_v6  ;;  %v4949_v6 = vld [vmem:[#allocation5 + $0x598] sm:$0xff] }
  0x7e   :  { %2083 = vmatpush.bf16.msrb.mxu0 %v4872_v14  ;;  %v4902_v14 = vld [vmem:[#allocation5 + $0x420] sm:$0xff]  ;;  %v4944_v57 = vld [vmem:[#allocation5 + $0x570] sm:$0xff] }
  0x7f   :  { %2097 = vmatpush.bf16.msrb.mxu1 %v4880_v19  ;;  %v4926_v19 = vld [vmem:[#allocation5 + $0x4e0] sm:$0xff]  ;;  %v4940_v47 = vld [vmem:[#allocation5 + $0x550] sm:$0xff] }
  0x80   :  { %2111 = vmatpush.bf16.msrb.mxu2 %v4888_v2  ;;  %v4917_v2 = vld [vmem:[#allocation5 + $0x498] sm:$0xff] }
  0x81   :  { %2125 = vmatpush.bf16.msrb.mxu3 %v4896_v22  ;;  %v4925_v22 = vld [vmem:[#allocation5 + $0x4d8] sm:$0xff] }
  0x82   :  { %2084 = vmatpush.bf16.msrb.mxu0 %v4871_v3  ;;  %v4900_v3 = vld [vmem:[#allocation5 + $0x410] sm:$0xff] }
  0x83   :  { %2098 = vmatpush.bf16.msrb.mxu1 %v4879_v4  ;;  %v4908_v4 = vld [vmem:[#allocation5 + $0x450] sm:$0xff] }
  0x84   :  { %2112 = vmatpush.bf16.msrb.mxu2 %v4887_v5  ;;  %v4916_v5 = vld [vmem:[#allocation5 + $0x490] sm:$0xff] }
  0x85   :  { %2126 = vmatpush.bf16.msrb.mxu3 %v4895_v23  ;;  %v4924_v23 = vld [vmem:[#allocation5 + $0x4d0] sm:$0xff] }
  0x86   :  { %2085 = vmatpush.bf16.msrb.mxu0 %v4870_v24  ;;  %v4899_v24 = vld [vmem:[#allocation5 + $0x408] sm:$0xff] }
  0x87   :  { %2099 = vmatpush.bf16.msrb.mxu1 %v4878_v25  ;;  %v4907_v25 = vld [vmem:[#allocation5 + $0x448] sm:$0xff] }
  0x88   :  { %2113 = vmatpush.bf16.msrb.mxu2 %v4886_v26  ;;  %v4915_v26 = vld [vmem:[#allocation5 + $0x488] sm:$0xff] }
  0x89   :  { %2127 = vmatpush.bf16.msrb.mxu3 %v4894_v27  ;;  %v4923_v27 = vld [vmem:[#allocation5 + $0x4c8] sm:$0xff] }
  0x8a   :  { %2086 = vmatpush.bf16.msrb.mxu0 %v4869_v28  ;;  %v4898_v28 = vld [vmem:[#allocation5 + $0x400] sm:$0xff] }
  0x8b   :  { %2100 = vmatpush.bf16.msrb.mxu1 %v4877_v33  ;;  %v4906_v33 = vld [vmem:[#allocation5 + $0x440] sm:$0xff] }
  0x8c   :  { %2114 = vmatpush.bf16.msrb.mxu2 %v4885_v34  ;;  %v4914_v34 = vld [vmem:[#allocation5 + $0x480] sm:$0xff] }
  0x8d   :  { %2128 = vmatpush.bf16.msrb.mxu3 %v4893_v35  ;;  %v4922_v35 = vld [vmem:[#allocation5 + $0x4c0] sm:$0xff] }
  0x8e   :  { %2087 = vmatpush.bf16.msrb.mxu0 %v4868_v36  ;;  %v4937_v36 = vld [vmem:[#allocation5 + $0x538] sm:$0xff] }
  0x8f   :  { %2101 = vmatpush.bf16.msrb.mxu1 %v4876_v37  ;;  %v4945_v37 = vld [vmem:[#allocation5 + $0x578] sm:$0xff] }
  0x90   :  { %2115 = vmatpush.bf16.msrb.mxu2 %v4884_v38  ;;  %v4953_v38 = vld [vmem:[#allocation5 + $0x5b8] sm:$0xff] }
  0x91   :  { %2129 = vmatpush.bf16.msrb.mxu3 %v4892_v39  ;;  %v4961_v39 = vld [vmem:[#allocation5 + $0x5f8] sm:$0xff] }
  0x92   :  { %2088 = vmatpush.bf16.msrb.mxu0 %v4867_v40  ;;  %v294_v40 = vld.sshfl [vmem:[#allocation1] sm:$0xff pattern:$0x73625140] }
  0x93   :  { %2102 = vmatpush.bf16.msrb.mxu1 %v4875_v41  ;;  %v296_v41 = vld.sshfl [vmem:[#allocation1 + $0x10] sm:$0xff pattern:$0x73625140] }
  0x94   :  { %2116 = vmatpush.bf16.msrb.mxu2 %v4883_v49  ;;  %v295_v49 = vld.sshfl [vmem:[#allocation1 + $0x8] sm:$0xff pattern:$0x73625140] }
  0x95   :  { %2130 = vmatpush.bf16.msrb.mxu3 %v4891_v51  ;;  %v297_v51 = vld.sshfl [vmem:[#allocation1 + $0x18] sm:$0xff pattern:$0x73625140]  ;;  %v367_v18 = vpack.c.bf16 %v295_v49, %v5359_v30  ;;  %v4935_v30 = vld [vmem:[#allocation5 + $0x528] sm:$0xff] }
  0x96   :  { %2089 = vmatpush.bf16.msrb.mxu0 %v4866_v52  ;;  %v132_v52 = vld [vmem:[#allocation2 + $0xe8] sm:$0xff]  ;;  %v369_v55 = vpack.c.bf16 %v297_v51, %v5363_v32 }
  0x97   :  { %2103 = vmatpush.bf16.msrb.mxu1 %v4874_v53  ;;  %v138_v53 = vld [vmem:[#allocation2 + $0x118] sm:$0xff]  ;;  %290 = vst [vmem:[#allocation1 + $0x20] ss:$4 sm:$0xff] %v132_v52  ;;  %v4951_v32 = vld [vmem:[#allocation5 + $0x5a8] sm:$0xff] }
  0x98   :  { %2117 = vmatpush.bf16.msrb.mxu2 %v4882_v10  ;;  %v144_v10 = vld [vmem:[#allocation2 + $0x148] sm:$0xff]  ;;  %291 = vst [vmem:[#allocation1 + $0x21] ss:$4 sm:$0xff] %v138_v53 }
  0x99   :  { %2131 = vmatpush.bf16.msrb.mxu3 %v4890_v15  ;;  %2090 = vmatmul.bf16.vlgmr.msrb.gmra.mxu0 %v362_v60  ;;  %v366_v15 = vpack.c.bf16 %v294_v40, %v5357_v29  ;;  %292 = vst [vmem:[#allocation1 + $0x22] ss:$4 sm:$0xff] %v144_v10  ;;  %v4960_v29 = vld [vmem:[#allocation5 + $0x5f0] sm:$0xff]  ;;  %v4934_v60 = vld [vmem:[#allocation5 + $0x520] sm:$0xff] }
  0x9a   :  { %2138 = vmatpush.bf16.msra.mxu0 %v4905_v54  ;;  %2104 = vmatmul.bf16.vlgmr.msrb.gmra.mxu1 %v363_v63  ;;  %v368_v54 = vpack.c.bf16 %v296_v41, %v5361_v31  ;;  %v4943_v31 = vld [vmem:[#allocation5 + $0x568] sm:$0xff]  ;;  %v4958_v63 = vld [vmem:[#allocation5 + $0x5e0] sm:$0xff] }
  0x9b   :  { %2152 = vmatpush.bf16.msra.mxu1 %v4913_v13  ;;  %2118 = vmatmul.bf16.vlgmr.msrb.gmra.mxu2 %v364_v61  ;;  %v150_v13 = vld [vmem:[#allocation2 + $0x178] sm:$0xff]  ;;  %v4942_v61 = vld [vmem:[#allocation5 + $0x560] sm:$0xff] }
  0x9c   :  { %2166 = vmatpush.bf16.msra.mxu2 %v4921_v58  ;;  %2132 = vmatmul.bf16.vlgmr.msrb.gmra.mxu3 %v365_v0  ;;  %v4952_v58 = vld [vmem:[#allocation5 + $0x5b0] sm:$0xff]  ;;  %293 = vst [vmem:[#allocation1 + $0x23] ss:$4 sm:$0xff] %v150_v13  ;;  %v4933_v0 = vld [vmem:[#allocation5 + $0x518] sm:$0xff]  ;;  %v4484_v10 = vld [vmem:[#allocation7 + $0x1c0] sm:$0xf] }
  0x9d   :  { %2180 = vmatpush.bf16.msra.mxu3 %v4929_v59  ;;  %v4959_v59 = vld [vmem:[#allocation5 + $0x5e8] sm:$0xff] }
  0x9e   :  { %2139 = vmatpush.bf16.msra.mxu0 %v4904_v45  ;;  %v4957_v45 = vld [vmem:[#allocation5 + $0x5d8] sm:$0xff] }
  0x9f   :  { %2153 = vmatpush.bf16.msra.mxu1 %v4912_v7  ;;  %v4932_v7 = vld [vmem:[#allocation5 + $0x510] sm:$0xff] }
  0xa0   :  { %2167 = vmatpush.bf16.msra.mxu2 %v4920_v42  ;;  %v4948_v42 = vld [vmem:[#allocation5 + $0x590] sm:$0xff] }
  0xa1   :  { %2181 = vmatpush.bf16.msra.mxu3 %v4928_v44  ;;  %v4956_v44 = vld [vmem:[#allocation5 + $0x5d0] sm:$0xff] }
  0xa2   :  { %2140 = vmatpush.bf16.msra.mxu0 %v4903_v43  ;;  %v4931_v43 = vld [vmem:[#allocation5 + $0x508] sm:$0xff] }
  0xa3   :  { %2154 = vmatpush.bf16.msra.mxu1 %v4911_v50  ;;  %v4939_v50 = vld [vmem:[#allocation5 + $0x548] sm:$0xff] }
  0xa4   :  { %2168 = vmatpush.bf16.msra.mxu2 %v4919_v8  ;;  %v4947_v8 = vld [vmem:[#allocation5 + $0x588] sm:$0xff] }
  0xa5   :  { %2182 = vmatpush.bf16.msra.mxu3 %v4927_v12  ;;  %v4955_v12 = vld [vmem:[#allocation5 + $0x5c8] sm:$0xff] }
  0xa6   :  { %2141 = vmatpush.bf16.msra.mxu0 %v4902_v14  ;;  %v4930_v14 = vld [vmem:[#allocation5 + $0x500] sm:$0xff] }
  0xa7   :  { %2155 = vmatpush.bf16.msra.mxu1 %v4910_v16  ;;  %v4938_v16 = vld [vmem:[#allocation5 + $0x540] sm:$0xff] }
  0xa8   :  { %2169 = vmatpush.bf16.msra.mxu2 %v4918_v17  ;;  %v4946_v17 = vld [vmem:[#allocation5 + $0x580] sm:$0xff] }
  0xa9   :  { %2183 = vmatpush.bf16.msra.mxu3 %v4926_v19  ;;  %v4954_v19 = vld [vmem:[#allocation5 + $0x5c0] sm:$0xff] }
  0xaa   :  { %2142 = vmatpush.bf16.msra.mxu0 %v4901_v20  ;;  %v298_v20 = vld.sshfl [vmem:[#allocation1 + $0x20] sm:$0xff pattern:$0x73625140] }
  0xab   :  { %2156 = vmatpush.bf16.msra.mxu1 %v4909_v21  ;;  %v299_v21 = vld.sshfl [vmem:[#allocation1 + $0x28] sm:$0xff pattern:$0x73625140] }
  0xac   :  { %2170 = vmatpush.bf16.msra.mxu2 %v4917_v2  ;;  %v300_v2 = vld.sshfl [vmem:[#allocation1 + $0x30] sm:$0xff pattern:$0x73625140] }
  0xad   :  { %2184 = vmatpush.bf16.msra.mxu3 %v4925_v22  ;;  %v301_v22 = vld.sshfl [vmem:[#allocation1 + $0x38] sm:$0xff pattern:$0x73625140] }
  0xae   :  { %2143 = vmatpush.bf16.msra.mxu0 %v4900_v3  ;;  %v370_v3 = vpack.c.bf16 %v298_v20, %v5377_v46  ;;  %v5002_v20 = vld [vmem:[#allocation7 + $0x144] sm:$0xf] }
  0xaf   :  { %2157 = vmatpush.bf16.msra.mxu1 %v4908_v4  ;;  %v371_v4 = vpack.c.bf16 %v299_v21, %v5379_v48 }
  0xb0   :  { %2171 = vmatpush.bf16.msra.mxu2 %v4916_v5  ;;  %v372_v5 = vpack.c.bf16 %v300_v2, %v5381_v9  ;;  %v5104_v9 = vld [vmem:[%s5503_s2] ss:$0 sm:$0xff]  ;;  %v4422_v2 = vld [vmem:[#allocation7 + $0x160] sm:$0xf0] }
  0xb1   :  { %2185 = vmatpush.bf16.msra.mxu3 %v4924_v23  ;;  %v373_v23 = vpack.c.bf16 %v301_v22, %v5383_v11  ;;  %v4428_v22 = vld [vmem:[#allocation7 + $0x148] sm:$0xf] }
  0xb2   :  { %2144 = vmatpush.bf16.msra.mxu0 %v4899_v24 }
  0xb3   :  { %2158 = vmatpush.bf16.msra.mxu1 %v4907_v25 }
  0xb4   :  { %2172 = vmatpush.bf16.msra.mxu2 %v4915_v26 }
  0xb5   :  { %2186 = vmatpush.bf16.msra.mxu3 %v4923_v27 }
  0xb6   :  { %2145 = vmatpush.bf16.msra.mxu0 %v4898_v28 }
  0xb7   :  { %2159 = vmatpush.bf16.msra.mxu1 %v4906_v33 }
  0xb8   :  { %2173 = vmatpush.bf16.msra.mxu2 %v4914_v34 }
  0xb9   :  { %2187 = vmatpush.bf16.msra.mxu3 %v4922_v35  ;;  %2146 = vmatmul.bf16.vlgmr.msra.gmra.mxu0 %v366_v15  ;;  %v5022_v15 = vld [vmem:[#allocation7 + $0x1dc] sm:$0xf0] }
  0xba   :  { %2194 = vmatpush.bf16.msrb.mxu0 %v4937_v36  ;;  %2160 = vmatmul.bf16.vlgmr.msra.gmra.mxu1 %v367_v18  ;;  %v4485_v18 = vor.u32 %v5022_v15, %v4484_v10  ;;  %v4398_v15 = vld [vmem:[#allocation7 + $0x128] sm:$0xf0] }
  0xbb   :  { %2208 = vmatpush.bf16.msrb.mxu1 %v4945_v37  ;;  %2174 = vmatmul.bf16.vlgmr.msra.gmra.mxu2 %v368_v54  ;;  %v5018_v54 = vld [vmem:[#allocation7 + $0x1c4] sm:$0xf] }
  0xbc   :  { %2222 = vmatpush.bf16.msrb.mxu2 %v4953_v38  ;;  %2188 = vmatmul.bf16.vlgmr.msra.gmra.mxu3 %v369_v55  ;;  %v4486_v55 = vld [vmem:[#allocation7 + $0x1e0] sm:$0xf0] }
  0xbd   :  { %2236 = vmatpush.bf16.msrb.mxu3 %v4961_v39 }
  0xbe   :  { %2195 = vmatpush.bf16.msrb.mxu0 %v4936_v56  ;;  %v4492_v56 = vld [vmem:[#allocation7 + $0x1c8] sm:$0xf] }
  0xbf   :  { %2209 = vmatpush.bf16.msrb.mxu1 %v4944_v57  ;;  %v5023_v57 = vld [vmem:[#allocation7 + $0x1e4] sm:$0xf0] }
  0xc0   :  { %2223 = vmatpush.bf16.msrb.mxu2 %v4952_v58 }
  0xc1   :  { %2237 = vmatpush.bf16.msrb.mxu3 %v4960_v29  ;;  %v4489_v29 = vor.u32 %v5018_v54, %v4486_v55  ;;  %v4356_v54 = vld [vmem:[#allocation7 + $0xc0] sm:$0xf] }
  0xc2   :  { %2196 = vmatpush.bf16.msrb.mxu0 %v4935_v30  ;;  %v4493_v30 = vor.u32 %v5023_v57, %v4492_v56  ;;  %v4986_v56 = vld [vmem:[#allocation7 + $0xc4] sm:$0xf] }
  0xc3   :  { %2210 = vmatpush.bf16.msrb.mxu1 %v4943_v31  ;;  %v5019_v31 = vld [vmem:[#allocation7 + $0x1cc] sm:$0xf]  ;;  %v4358_v57 = vld [vmem:[#allocation7 + $0xe0] sm:$0xf0] }
  0xc4   :  { %2224 = vmatpush.bf16.msrb.mxu2 %v4951_v32  ;;  %v4494_v32 = vld [vmem:[#allocation7 + $0x1e8] sm:$0xf0] }
  0xc5   :  { %2238 = vmatpush.bf16.msrb.mxu3 %v4959_v59  ;;  %v4452_v59 = vld [vmem:[#allocation7 + $0x180] sm:$0xf] }
  0xc6   :  { %2197 = vmatpush.bf16.msrb.mxu0 %v4934_v60 }
  0xc7   :  { %2211 = vmatpush.bf16.msrb.mxu1 %v4942_v61  ;;  %v4497_v61 = vor.u32 %v5019_v31, %v4494_v32 }
  0xc8   :  { %2225 = vmatpush.bf16.msrb.mxu2 %v4950_v62  ;;  %v5014_v62 = vld [vmem:[#allocation7 + $0x19c] sm:$0xf0] }
  0xc9   :  { %2239 = vmatpush.bf16.msrb.mxu3 %v4958_v63  ;;  %v5010_v63 = vld [vmem:[#allocation7 + $0x184] sm:$0xf] }
  0xca   :  { %2198 = vmatpush.bf16.msrb.mxu0 %v4933_v0  ;;  %v4454_v0 = vld [vmem:[#allocation7 + $0x1a0] sm:$0xf0] }
  0xcb   :  { %2212 = vmatpush.bf16.msrb.mxu1 %v4941_v1  ;;  %v4453_v1 = vor.u32 %v5014_v62, %v4452_v59  ;;  %v4991_v59 = vld [vmem:[#allocation7 + $0xe4] sm:$0xf0] }
  0xcc   :  { %2226 = vmatpush.bf16.msrb.mxu2 %v4949_v6  ;;  %v4457_v6 = vor.u32 %v5010_v63, %v4454_v0  ;;  %v4361_v63 = vor.u32 %v4986_v56, %v4358_v57  ;;  %v4324_v0 = vld [vmem:[#allocation7 + $0x80] sm:$0xf]  ;;  %v4268_v56 = vld [vmem:[#allocation7 + $0x8] sm:$0xf] }
  0xcd   :  { %2240 = vmatpush.bf16.msrb.mxu3 %v4957_v45  ;;  %v4460_v45 = vld [vmem:[#allocation7 + $0x188] sm:$0xf] }
  0xce   :  { %2199 = vmatpush.bf16.msrb.mxu0 %v4932_v7  ;;  %v5015_v7 = vld [vmem:[#allocation7 + $0x1a4] sm:$0xf0] }
  0xcf   :  { %2213 = vmatpush.bf16.msrb.mxu1 %v4940_v47  ;;  %v5011_v47 = vld [vmem:[#allocation7 + $0x18c] sm:$0xf]  ;;  %v4967_v57 = vld [vmem:[#allocation7 + $0x24] sm:$0xf0] }
  0xd0   :  { %2227 = vmatpush.bf16.msrb.mxu2 %v4948_v42  ;;  %v1923_v24 = vpop.f32.mrf.mxu0 }
  0xd1   :  { %2241 = vmatpush.bf16.msrb.mxu3 %v4956_v44  ;;  %v1937_v25 = vpop.f32.mrf.mxu1  ;;  %v1924_v38 = vadd.f32 %v5104_v9, %v1923_v24  ;;  %v5003_v24 = vld [vmem:[#allocation7 + $0x14c] sm:$0xf] }
  0xd2   :  { %2200 = vmatpush.bf16.msrb.mxu0 %v4931_v43  ;;  %v4461_v43 = vor.u32 %v5015_v7, %v4460_v45  ;;  %v4332_v7 = vld [vmem:[#allocation7 + $0x88] sm:$0xf] }
  0xd3   :  { %2214 = vmatpush.bf16.msrb.mxu1 %v4939_v50  ;;  %v1938_v40 = vadd.f32 %v1937_v25, %v1924_v38  ;;  %v4462_v50 = vld [vmem:[#allocation7 + $0x1a8] sm:$0xf0] }
  0xd4   :  { %2228 = vmatpush.bf16.msrb.mxu2 %v4947_v8  ;;  %v4430_v25 = vld [vmem:[#allocation7 + $0x168] sm:$0xf0] }
  0xd5   :  { %2242 = vmatpush.bf16.msrb.mxu3 %v4955_v12  ;;  %v1951_v26 = vpop.f32.mrf.mxu2  ;;  %v4465_v12 = vor.u32 %v5011_v47, %v4462_v50  ;;  %v4983_v47 = vld [vmem:[#allocation7 + $0xa4] sm:$0xf0]  ;;  %v4979_v50 = vld [vmem:[#allocation7 + $0x8c] sm:$0xf] }
  0xd6   :  { %2201 = vmatpush.bf16.msrb.mxu0 %v4930_v14  ;;  %v1952_v53 = vadd.f32 %v1951_v26, %v1938_v40  ;;  %v4388_v26 = vld [vmem:[#allocation7 + $0x100] sm:$0xf] }
  0xd7   :  { %2215 = vmatpush.bf16.msrb.mxu1 %v4938_v16 }
  0xd8   :  { %2229 = vmatpush.bf16.msrb.mxu2 %v4946_v17  ;;  %v1925_v28 = vpop.f32.mrf.mxu0  ;;  %v4420_v17 = vld [vmem:[#allocation7 + $0x140] sm:$0xf] }
  0xd9   :  { %2243 = vmatpush.bf16.msrb.mxu3 %v4954_v19  ;;  %2202 = vmatmul.bf16.vlgmr.msrb.gmra.mxu0 %v370_v3  ;;  %v1965_v27 = vpop.f32.mrf.mxu3  ;;  %v1939_v46 = vpop.f32.mrf.mxu1  ;;  %v1926_v51 = vadd.f32 %v5104_v9, %v1925_v28  ;;  %v5006_v19 = vld [vmem:[#allocation7 + $0x15c] sm:$0xf0]  ;;  %v5007_v3 = vld [vmem:[#allocation7 + $0x164] sm:$0xf0]  ;;  %v4390_v9 = vld [vmem:[#allocation7 + $0x120] sm:$0xf0] }
  0xda   :  { %2216 = vmatmul.bf16.vlgmr.msrb.gmra.mxu1 %v371_v4  ;;  %v1966_v60 = vadd.f32 %v1965_v27, %v1952_v53  ;;  %2655 = vmatpush.bf16.msra.mxu0 %v4485_v18  ;;  %v4421_v21 = vor.u32 %v5006_v19, %v4420_v17  ;;  %v4995_v53 = vld [vmem:[#allocation7 + $0x10c] sm:$0xf]  ;;  %v4990_v18 = vld [vmem:[#allocation7 + $0xdc] sm:$0xf0] }
  0xdb   :  { %2230 = vmatmul.bf16.vlgmr.msrb.gmra.mxu2 %v372_v5  ;;  %v1940_v58 = vadd.f32 %v1939_v46, %v1926_v51  ;;  %2669 = vmatpush.bf16.msra.mxu1 %v4489_v29  ;;  %v4425_v5 = vor.u32 %v5002_v20, %v4422_v2  ;;  %v4433_v46 = vor.u32 %v5003_v24, %v4430_v25  ;;  %v4396_v51 = vld [vmem:[#allocation7 + $0x108] sm:$0xf]  ;;  %v4294_v24 = vld [vmem:[#allocation7 + $0x60] sm:$0xf0] }
  0xdc   :  { %2244 = vmatmul.bf16.vlgmr.msrb.gmra.mxu3 %v373_v23  ;;  %2683 = vmatpush.bf16.msra.mxu2 %v4493_v30  ;;  %v4429_v23 = vor.u32 %v5007_v3, %v4428_v22  ;;  %v4401_v55 = vor.u32 %v4995_v53, %v4398_v15  ;;  %v4357_v32 = vor.u32 %v4990_v18, %v4356_v54  ;;  %v4300_v25 = vld [vmem:[#allocation7 + $0x48] sm:$0xf]  ;;  %v4966_v15 = vld [vmem:[#allocation7 + $0x1c] sm:$0xf0]  ;;  %v4962_v54 = vld [vmem:[#allocation7 + $0x4] sm:$0xf] }
  0xdd   :  { %v1953_v33 = vpop.f32.mrf.mxu2  ;;  %2697 = vmatpush.bf16.msra.mxu3 %v4497_v61  ;;  %v4366_v61 = vld [vmem:[#allocation7 + $0xe8] sm:$0xf0] }
  0xde   :  { %v1954_v8 = vadd.f32 %v1953_v33, %v1940_v58  ;;  %2656 = vmatpush.bf16.msra.mxu0 %v4453_v1  ;;  %v4998_v33 = vld [vmem:[#allocation7 + $0x11c] sm:$0xf0]  ;;  %v4364_v58 = vld [vmem:[#allocation7 + $0xc8] sm:$0xf] }
  0xdf   :  { %2670 = vmatpush.bf16.msra.mxu1 %v4457_v6  ;;  %v4389_v38 = vor.u32 %v4998_v33, %v4388_v26  ;;  %v4982_v1 = vld [vmem:[#allocation7 + $0x9c] sm:$0xf0]  ;;  %v4978_v6 = vld [vmem:[#allocation7 + $0x84] sm:$0xf]  ;;  %v4975_v26 = vld [vmem:[#allocation7 + $0x64] sm:$0xf0] }
  0xe0   :  { %v1979_v34 = vpop.f32.mrf.mxu0  ;;  %2684 = vmatpush.bf16.msra.mxu2 %v4461_v43  ;;  %v4325_v17 = vor.u32 %v4982_v1, %v4324_v0  ;;  %v4971_v33 = vld [vmem:[#allocation7 + $0x4c] sm:$0xf]  ;;  %v4508_v1 = vld [vmem:[#allocation7 + $0x1d8] sm:$0xf] }
  0xe1   :  { %v1967_v48 = vpop.f32.mrf.mxu3  ;;  %v5405_v35 = vpop.f32.mrf.mxu1  ;;  %v1980_v14 = vadd.f32 %v1979_v34, %v1966_v60  ;;  %2698 = vmatpush.bf16.msra.mxu3 %v4465_v12  ;;  %v4994_v34 = vld [vmem:[#allocation7 + $0x104] sm:$0xf]  ;;  %v4987_v60 = vld [vmem:[#allocation7 + $0xcc] sm:$0xf] }
  0xe2   :  { %v1968_v4 = vadd.f32 %v1967_v48, %v1954_v8  ;;  %2657 = vmatpush.bf16.msra.mxu0 %v4421_v21  ;;  %v4393_v40 = vor.u32 %v4994_v34, %v4390_v9  ;;  %v4999_v48 = vld [vmem:[#allocation7 + $0x124] sm:$0xf0]  ;;  %v4369_v45 = vor.u32 %v4987_v60, %v4366_v61  ;;  %v4334_v8 = vld [vmem:[#allocation7 + $0xa8] sm:$0xf0]  ;;  %v4333_v21 = vor.u32 %v4983_v47, %v4332_v7  ;;  %v5024_v60 = vld [vmem:[#allocation7 + $0x1ec] sm:$0xf0] }
  0xe3   :  { %v1994_v27 = vadd.f32 %v5405_v35, %v1980_v14  ;;  %2671 = vmatpush.bf16.msra.mxu1 %v4425_v5  ;;  %v4397_v10 = vor.u32 %v4999_v48, %v4396_v51  ;;  %v4337_v22 = vor.u32 %v4979_v50, %v4334_v8  ;;  %v4970_v5 = vld [vmem:[#allocation7 + $0x44] sm:$0xf]  ;;  %v4302_v34 = vld [vmem:[#allocation7 + $0x68] sm:$0xf0]  ;;  %v5020_v61 = vld [vmem:[#allocation7 + $0x1d4] sm:$0xf] }
  0xe4   :  { %2685 = vmatpush.bf16.msra.mxu2 %v4429_v23  ;;  %v4468_v50 = vld [vmem:[#allocation7 + $0x190] sm:$0xf] }
  0xe5   :  { %v5410_v11 = vpop.f32.mrf.mxu2  ;;  %2699 = vmatpush.bf16.msra.mxu3 %v4433_v46  ;;  %v4301_v46 = vor.u32 %v4975_v26, %v4300_v25  ;;  %v5016_v8 = vld [vmem:[#allocation7 + $0x1ac] sm:$0xf0] }
  0xe6   :  { %v2008_v29 = vadd.f32 %v5410_v11, %v1994_v27  ;;  %2658 = vmatpush.bf16.msra.mxu0 %v4389_v38  ;;  %v4326_v11 = vld [vmem:[#allocation7 + $0xa0] sm:$0xf0]  ;;  %v4297_v27 = vor.u32 %v4970_v5, %v4294_v24  ;;  %v4436_v26 = vld [vmem:[#allocation7 + $0x150] sm:$0xf] }
  0xe7   :  { %2672 = vmatpush.bf16.msra.mxu1 %v4393_v40  ;;  %v4329_v20 = vor.u32 %v4978_v6, %v4326_v11  ;;  %v4305_v40 = vor.u32 %v4971_v33, %v4302_v34  ;;  %v5025_v6 = vld [vmem:[#allocation7 + $0x1f4] sm:$0xf0]  ;;  %v4438_v33 = vld [vmem:[#allocation7 + $0x170] sm:$0xf0] }
  0xe8   :  { %v5414_v37 = vpop.f32.mrf.mxu0  ;;  %2686 = vmatpush.bf16.msra.mxu2 %v4397_v10  ;;  %v4260_v10 = vld [vmem:[#allocation7] sm:$0xf]  ;;  %v4509_v47 = vor.u32 %v5025_v6, %v4508_v1  ;;  %v4444_v34 = vld [vmem:[#allocation7 + $0x158] sm:$0xf]  ;;  %v4382_v1 = vld [vmem:[#allocation7 + $0xf8] sm:$0xf0] }
  0xe9   :  { %v5412_v36 = vpop.f32.mrf.mxu3  ;;  %v5416_v39 = vpop.f32.mrf.mxu1  ;;  %v1982_v35 = vadd.f32 %v5414_v37, %v1968_v4  ;;  %v4365_v37 = vor.u32 %v4991_v59, %v4364_v58  ;;  %2700 = vmatpush.bf16.msra.mxu3 %v4401_v55  ;;  %v4974_v4 = vld [vmem:[#allocation7 + $0x5c] sm:$0xf0]  ;;  %v4262_v55 = vld [vmem:[#allocation7 + $0x20] sm:$0xf0]  ;;  %v4500_v59 = vld [vmem:[#allocation7 + $0x1d0] sm:$0xf] }
  0xea   :  { %v2022_v12 = vadd.f32 %v5412_v36, %v2008_v29  ;;  %2659 = vmatpush.bf16.msra.mxu0 %v4357_v32  ;;  %v4292_v36 = vld [vmem:[#allocation7 + $0x40] sm:$0xf]  ;;  %v4265_v29 = vor.u32 %v4962_v54, %v4262_v55  ;;  %v4963_v32 = vld [vmem:[#allocation7 + $0xc] sm:$0xf]  ;;  %v5000_v54 = vld [vmem:[#allocation7 + $0x12c] sm:$0xf0] }
  0xeb   :  { %v1996_v43 = vadd.f32 %v5416_v39, %v1982_v35  ;;  %2673 = vmatpush.bf16.msra.mxu1 %v4361_v63 }
  0xec   :  { %2687 = vmatpush.bf16.msra.mxu2 %v4365_v37  ;;  %v4501_v37 = vor.u32 %v5024_v60, %v4500_v59  ;;  %v4992_v59 = vld [vmem:[#allocation7 + $0xec] sm:$0xf0]  ;;  %v4988_v60 = vld [vmem:[#allocation7 + $0xd4] sm:$0xf] }
  0xed   :  { %v5418_v41 = vpop.f32.mrf.mxu2  ;;  %2701 = vmatpush.bf16.msra.mxu3 %v4369_v45  ;;  %v5021_v45 = vld [vmem:[#allocation7 + $0x1dc] sm:$0xf] }
  0xee   :  { %v2010_v19 = vadd.f32 %v5418_v41, %v1996_v43  ;;  %2660 = vmatpush.bf16.msra.mxu0 %v4325_v17  ;;  %v4293_v41 = vor.u32 %v4974_v4, %v4292_v36  ;;  %v4510_v43 = vld [vmem:[#allocation7 + $0x1f8] sm:$0xf0]  ;;  %v4469_v17 = vor.u32 %v5016_v8, %v4468_v50 }
  0xef   :  { %2674 = vmatpush.bf16.msra.mxu1 %v4329_v20  ;;  %v4470_v20 = vld [vmem:[#allocation7 + $0x1b0] sm:$0xf0]  ;;  %v5013_v36 = vld [vmem:[#allocation7 + $0x19c] sm:$0xf] }
  0xf0   :  { %2688 = vmatpush.bf16.msra.mxu2 %v4333_v21  ;;  %v4476_v21 = vld [vmem:[#allocation7 + $0x198] sm:$0xf]  ;;  %v4478_v4 = vld [vmem:[#allocation7 + $0x1b8] sm:$0xf0] }
  0xf1   :  { %v5420_v49 = vpop.f32.mrf.mxu3  ;;  %2702 = vmatpush.bf16.msra.mxu3 %v4337_v22 }
  0xf2   :  { %v2024_v23 = vadd.f32 %v5420_v49, %v2010_v19  ;;  %2661 = vmatpush.bf16.msra.mxu0 %v4293_v41  ;;  %v5012_v19 = vld [vmem:[#allocation7 + $0x194] sm:$0xf] }
  0xf3   :  { %2675 = vmatpush.bf16.msra.mxu1 %v4297_v27  ;;  %v4473_v22 = vor.u32 %v5012_v19, %v4470_v20  ;;  %v5004_v27 = vld [vmem:[#allocation7 + $0x154] sm:$0xf]  ;;  %v4348_v20 = vld [vmem:[#allocation7 + $0x98] sm:$0xf] }
  0xf4   :  { %2689 = vmatpush.bf16.msra.mxu2 %v4301_v46 }
  0xf5   :  { %2703 = vmatpush.bf16.msra.mxu3 %v4305_v40 }
  0xf6   :  { %v5422_v52 = vpop.f32.mrf.mxu0 }
  0xf7   :  { %v5424_v13 = vpop.f32.mrf.mxu1  ;;  %v2036_v2 = vadd.f32 %v5422_v52, %v2022_v12  ;;  %2676 = vmatpush.bf16.msra.mxu1 %v4265_v29 }
  0xf9   :  { %v2050_v52 = vadd.f32 %v5424_v13, %v2036_v2 }
  0xfe   :  { %v5426_v42 = vpop.f32.mrf.mxu2  ;;  %v5430_v16 = vpop.f32.mrf.mxu0 }
  0xff   :  { %v5428_v44 = vpop.f32.mrf.mxu3  ;;  %v5433_v28 = vpop.f32.mrf.mxu1  ;;  %v2038_v9 = vadd.f32 %v5430_v16, %v2024_v23  ;;  %v2064_v51 = vadd.f32 %v5426_v42, %v2050_v52  ;;  %v4261_v42 = vor.u32 %v4966_v15, %v4260_v10  ;;  %v4481_v23 = vor.u32 %v5013_v36, %v4478_v4  ;;  %v5008_v52 = vld [vmem:[#allocation7 + $0x16c] sm:$0xf0] }
 0x101   :  { %v2052_v48 = vadd.f32 %v5433_v28, %v2038_v9  ;;  %v2078_v13 = vadd.f32 %v5428_v44, %v2064_v51  ;;  %v4269_v28 = vor.u32 %v4967_v57, %v4268_v56  ;;  %v4270_v44 = vld [vmem:[#allocation7 + $0x28] sm:$0xf0]  ;;  %2662 = vmatpush.bf16.msra.mxu0 %v4261_v42  ;;  %v5009_v9 = vld [vmem:[#allocation7 + $0x174] sm:$0xf0]  ;;  %v4441_v51 = vor.u32 %v5004_v27, %v4438_v33  ;;  %v4310_v27 = vld [vmem:[#allocation7 + $0x70] sm:$0xf0] }
 0x102   :  { %v4412_v56 = vld [vmem:[#allocation7 + $0x118] sm:$0xf] }
 0x103   :  { %2690 = vmatpush.bf16.msra.mxu2 %v4269_v28  ;;  %v5001_v57 = vld [vmem:[#allocation7 + $0x134] sm:$0xf0] }
 0x104   :  { %v4413_v28 = vor.u32 %v5001_v57, %v4412_v56  ;;  %v4316_v33 = vld [vmem:[#allocation7 + $0x58] sm:$0xf] }
 0x105   :  { %2711 = vmatpush.bf16.msrb.mxu0 %v4501_v37  ;;  %v4993_v37 = vld [vmem:[#allocation7 + $0xf4] sm:$0xf0] }
 0x106   :  { %v5437_v30 = vpop.f32.mrf.mxu2  ;;  %v4969_v56 = vld [vmem:[#allocation7 + $0x34] sm:$0xf0] }
 0x107   :  { %v5439_v31 = vpop.f32.mrf.mxu3  ;;  %v2066_v53 = vadd.f32 %v5437_v30, %v2052_v48  ;;  %v4273_v30 = vor.u32 %v4963_v32, %v4270_v44  ;;  %2739 = vmatpush.bf16.msrb.mxu2 %v4509_v47  ;;  %v4445_v48 = vor.u32 %v5009_v9, %v4444_v34  ;;  %v4414_v32 = vld [vmem:[#allocation7 + $0x138] sm:$0xf0]  ;;  %v4372_v44 = vld [vmem:[#allocation7 + $0xd0] sm:$0xf]  ;;  %v4977_v34 = vld [vmem:[#allocation7 + $0x74] sm:$0xf0] }
 0x108   :  { %v4340_v47 = vld [vmem:[#allocation7 + $0x90] sm:$0xf] }
 0x109   :  { %v2080_v63 = vadd.f32 %v5439_v31, %v2066_v53  ;;  %2704 = vmatpush.bf16.msra.mxu3 %v4273_v30  ;;  %v4513_v31 = vor.u32 %v5021_v45, %v4510_v43  ;;  %2712 = vmatpush.bf16.msrb.mxu0 %v4469_v17  ;;  %v4404_v53 = vld [vmem:[#allocation7 + $0x110] sm:$0xf]  ;;  %v4373_v45 = vor.u32 %v4992_v59, %v4372_v44  ;;  %v4342_v17 = vld [vmem:[#allocation7 + $0xb0] sm:$0xf0] }
 0x10a   :  { %v4405_v42 = vor.u32 %v5000_v54, %v4404_v53  ;;  %v4317_v53 = vor.u32 %v4977_v34, %v4316_v33  ;;  %v4278_v54 = vld [vmem:[#allocation7 + $0x30] sm:$0xf0]  ;;  %v5026_v33 = vld [vmem:[#allocation10] sm:$0xff] }
 0x10b   :  { %v5034_v34 = vld [vmem:[#allocation10 + $0x40] sm:$0xff] }
 0x10d   :  { %2753 = vmatpush.bf16.msrb.mxu3 %v4513_v31  ;;  %v4980_v31 = vld [vmem:[#allocation7 + $0x94] sm:$0xf] }
 0x10e   :  { %v4345_v4 = vor.u32 %v4980_v31, %v4342_v17  ;;  %v5048_v31 = vld [vmem:[#allocation10 + $0xb0] sm:$0xff] }
 0x10f   :  { %v5056_v17 = vld [vmem:[#allocation10 + $0xf0] sm:$0xff] }
 0x111   :  { %2754 = vmatpush.bf16.msrb.mxu3 %v4481_v23 }
 0x116   :  { %v2091_v62 = vpop.f32.mrf.mxu0 }
 0x117   :  { %v5443_v14 = vpop.f32.mrf.mxu1  ;;  %v2092_v18 = vadd.f32 %v2091_v62, %v2078_v13  ;;  %v4502_v62 = vld [vmem:[#allocation7 + $0x1f0] sm:$0xf0]  ;;  %v5005_v13 = vld [vmem:[#allocation7 + $0x15c] sm:$0xf] }
 0x118   :  { %v4505_v0 = vor.u32 %v5020_v61, %v4502_v62  ;;  %v4374_v61 = vld [vmem:[#allocation7 + $0xf0] sm:$0xf0]  ;;  %v4380_v62 = vld [vmem:[#allocation7 + $0xd8] sm:$0xf] }
 0x119   :  { %v2106_v11 = vadd.f32 %v5443_v14, %v2092_v18  ;;  %v5017_v14 = vld [vmem:[#allocation7 + $0x1b4] sm:$0xf0]  ;;  %v4996_v18 = vld [vmem:[#allocation7 + $0x114] sm:$0xf] }
 0x11a   :  { %2725 = vmatpush.bf16.msrb.mxu1 %v4505_v0  ;;  %v4477_v5 = vor.u32 %v5017_v14, %v4476_v21  ;;  %v4989_v0 = vld [vmem:[#allocation7 + $0xdc] sm:$0xf]  ;;  %v4985_v21 = vld [vmem:[#allocation7 + $0xb4] sm:$0xf0] }
 0x11c   :  { %2740 = vmatpush.bf16.msrb.mxu2 %v4477_v5  ;;  %v4308_v5 = vld [vmem:[#allocation7 + $0x50] sm:$0xf] }
 0x11e   :  { %v5447_v3 = vpop.f32.mrf.mxu2  ;;  %v2093_v38 = vpop.f32.mrf.mxu0  ;;  %2726 = vmatpush.bf16.msrb.mxu1 %v4473_v22  ;;  %v4350_v22 = vld [vmem:[#allocation7 + $0xb8] sm:$0xf0] }
 0x11f   :  { %v5449_v39 = vpop.f32.mrf.mxu3  ;;  %v2107_v49 = vpop.f32.mrf.mxu1  ;;  %v2094_v12 = vadd.f32 %v2093_v38, %v2080_v63  ;;  %v2120_v2 = vadd.f32 %v5447_v3, %v2106_v11  ;;  %v4437_v3 = vor.u32 %v5008_v52, %v4436_v26  ;;  %v4377_v11 = vor.u32 %v4988_v60, %v4374_v61  ;;  %v4976_v26 = vld [vmem:[#allocation7 + $0x6c] sm:$0xf0]  ;;  %v4972_v52 = vld [vmem:[#allocation7 + $0x54] sm:$0xf] }
 0x120   :  { %2741 = vmatpush.bf16.msrb.mxu2 %v4445_v48  ;;  %v4313_v48 = vor.u32 %v4972_v52, %v4310_v27  ;;  %v5044_v52 = vld [vmem:[#allocation10 + $0x90] sm:$0xff] }
 0x121   :  { %v2108_v25 = vadd.f32 %v2107_v49, %v2094_v12  ;;  %v2134_v46 = vadd.f32 %v5449_v39, %v2120_v2  ;;  %v4446_v49 = vld [vmem:[#allocation7 + $0x178] sm:$0xf0]  ;;  %v4406_v39 = vld [vmem:[#allocation7 + $0x130] sm:$0xf0]  ;;  %2713 = vmatpush.bf16.msrb.mxu0 %v4437_v3  ;;  %v4984_v12 = vld [vmem:[#allocation7 + $0xac] sm:$0xf0] }
 0x122   :  { %v4449_v15 = vor.u32 %v5005_v13, %v4446_v49  ;;  %2727 = vmatpush.bf16.msrb.mxu1 %v4441_v51  ;;  %v4409_v55 = vor.u32 %v4996_v18, %v4406_v39  ;;  %v4981_v2 = vld [vmem:[#allocation7 + $0x9c] sm:$0xf]  ;;  %v4341_v36 = vor.u32 %v4984_v12, %v4340_v47  ;;  %v4309_v51 = vor.u32 %v4976_v26, %v4308_v5  ;;  %v4276_v13 = vld [vmem:[#allocation7 + $0x10] sm:$0xf]  ;;  %v5033_v47 = vld [vmem:[#allocation10 + $0x38] sm:$0xff] }
 0x123   :  { %v4353_v3 = vor.u32 %v4981_v2, %v4350_v22  ;;  %v5040_v12 = vld [vmem:[#allocation10 + $0x70] sm:$0xff]  ;;  %v5030_v2 = vld [vmem:[#allocation10 + $0x20] sm:$0xff]  ;;  %v5037_v5 = vld [vmem:[#allocation10 + $0x58] sm:$0xff] }
 0x124   :  { %2755 = vmatpush.bf16.msrb.mxu3 %v4449_v15  ;;  %2742 = vmatpush.bf16.msrb.mxu2 %v4413_v28  ;;  %v4964_v15 = vld [vmem:[#allocation7 + $0x14] sm:$0xf]  ;;  %v5038_v22 = vld [vmem:[#allocation10 + $0x60] sm:$0xff]  ;;  %v5036_v26 = vld [vmem:[#allocation10 + $0x50] sm:$0xff] }
 0x125   :  { %2714 = vmatpush.bf16.msrb.mxu0 %v4405_v42  ;;  %v4281_v44 = vor.u32 %v4964_v15, %v4278_v54  ;;  %v5052_v27 = vld [vmem:[#allocation10 + $0xd0] sm:$0xff]  ;;  %v5063_v15 = vld [vmem:[#allocation10 + $0x128] sm:$0xff] }
 0x126   :  { %v5458_v16 = vpop.f32.mrf.mxu2  ;;  %2728 = vmatpush.bf16.msrb.mxu1 %v4409_v55  ;;  %v4284_v55 = vld [vmem:[#allocation7 + $0x18] sm:$0xf]  ;;  %v5071_v54 = vld [vmem:[#allocation10 + $0x168] sm:$0xff] }
 0x127   :  { %v5460_v35 = vpop.f32.mrf.mxu3  ;;  %v2122_v38 = vadd.f32 %v5458_v16, %v2108_v25  ;;  %v4997_v16 = vld [vmem:[#allocation7 + $0x11c] sm:$0xf]  ;;  %v4349_v25 = vor.u32 %v4985_v21, %v4348_v20  ;;  %v4285_v59 = vor.u32 %v4969_v56, %v4284_v55  ;;  %v5047_v20 = vld [vmem:[#allocation10 + $0xa8] sm:$0xff]  ;;  %v5070_v55 = vld [vmem:[#allocation10 + $0x160] sm:$0xff] }
 0x128   :  { %v5055_v21 = vld [vmem:[#allocation10 + $0xe8] sm:$0xff] }
 0x129   :  { %v2136_v30 = vadd.f32 %v5460_v35, %v2122_v38  ;;  %v4381_v35 = vor.u32 %v4993_v37, %v4380_v62  ;;  %2715 = vmatpush.bf16.msrb.mxu0 %v4373_v45  ;;  %v4973_v38 = vld [vmem:[#allocation7 + $0x5c] sm:$0xf]  ;;  %v5079_v56 = vld [vmem:[#allocation10 + $0x1a8] sm:$0xff] }
 0x12a   :  { %2729 = vmatpush.bf16.msrb.mxu1 %v4377_v11 }
 0x12b   :  { %2743 = vmatpush.bf16.msrb.mxu2 %v4381_v35  ;;  %v5032_v35 = vld [vmem:[#allocation10 + $0x30] sm:$0xff] }
 0x12d   :  { %2716 = vmatpush.bf16.msrb.mxu0 %v4341_v36  ;;  %v5054_v36 = vld [vmem:[#allocation10 + $0xe0] sm:$0xff] }
 0x12e   :  { %2730 = vmatpush.bf16.msrb.mxu1 %v4345_v4  ;;  %v5029_v4 = vld [vmem:[#allocation10 + $0x18] sm:$0xff] }
 0x12f   :  { %2744 = vmatpush.bf16.msrb.mxu2 %v4349_v25  ;;  %v5028_v25 = vld [vmem:[#allocation10 + $0x10] sm:$0xff] }
 0x131   :  { %2717 = vmatpush.bf16.msrb.mxu0 %v4309_v51  ;;  %v5051_v51 = vld [vmem:[#allocation10 + $0xc8] sm:$0xff] }
 0x132   :  { %2731 = vmatpush.bf16.msrb.mxu1 %v4313_v48  ;;  %v5064_v48 = vld [vmem:[#allocation10 + $0x130] sm:$0xff] }
 0x133   :  { %2745 = vmatpush.bf16.msrb.mxu2 %v4317_v53  ;;  %v5081_v53 = vld [vmem:[#allocation10 + $0x1b8] sm:$0xff] }
 0x136   :  { %v5462_v58 = vpop.f32.mrf.mxu0  ;;  %2732 = vmatpush.bf16.msrb.mxu1 %v4281_v44  ;;  %v5060_v44 = vld [vmem:[#allocation10 + $0x110] sm:$0xff] }
 0x137   :  { %v5466_v7 = vpop.f32.mrf.mxu1  ;;  %v2148_v10 = vadd.f32 %v5462_v58, %v2134_v46  ;;  %v4417_v58 = vor.u32 %v4997_v16, %v4414_v32  ;;  %v4965_v16 = vld [vmem:[#allocation7 + $0x1c] sm:$0xf]  ;;  %2746 = vmatpush.bf16.msrb.mxu2 %v4285_v59 }
 0x138   :  { %v5068_v59 = vld [vmem:[#allocation10 + $0x150] sm:$0xff] }
 0x139   :  { %v2162_v63 = vadd.f32 %v5466_v7, %v2148_v10  ;;  %2756 = vmatpush.bf16.msrb.mxu3 %v4417_v58  ;;  %v4385_v7 = vor.u32 %v4989_v0, %v4382_v1  ;;  %v4968_v10 = vld [vmem:[#allocation7 + $0x2c] sm:$0xf0] }
 0x13a   :  { %v4277_v32 = vor.u32 %v4968_v10, %v4276_v13  ;;  %v5072_v13 = vld [vmem:[#allocation10 + $0x170] sm:$0xff]  ;;  %v5089_v10 = vld [vmem:[#allocation10 + $0x1f8] sm:$0xff] }
 0x13c   :  { %2718 = vmatpush.bf16.msrb.mxu0 %v4277_v32  ;;  %v5086_v32 = vld [vmem:[#allocation10 + $0x1e0] sm:$0xff] }
 0x13d   :  { %2757 = vmatpush.bf16.msrb.mxu3 %v4385_v7  ;;  %v5039_v7 = vld [vmem:[#allocation10 + $0x68] sm:$0xff] }
 0x13e   :  { %v2175_v41 = vpop.f32.mrf.mxu2  ;;  %v2149_v40 = vpop.f32.mrf.mxu0 }
 0x13f   :  { %v5469_v24 = vpop.f32.mrf.mxu3  ;;  %v2163_v29 = vpop.f32.mrf.mxu1  ;;  %v2150_v6 = vadd.f32 %v2149_v40, %v2136_v30  ;;  %v2176_v43 = vadd.f32 %v2175_v41, %v2162_v63  ;;  %v4318_v40 = vld [vmem:[#allocation7 + $0x78] sm:$0xf0] }
 0x140   :  { %v4321_v42 = vor.u32 %v4973_v38, %v4318_v40  ;;  %v5073_v38 = vld [vmem:[#allocation10 + $0x178] sm:$0xff]  ;;  %v5043_v40 = vld [vmem:[#allocation10 + $0x88] sm:$0xff] }
 0x141   :  { %v2164_v14 = vadd.f32 %v2163_v29, %v2150_v6  ;;  %v2190_v23 = vadd.f32 %v5469_v24, %v2176_v43  ;;  %2758 = vmatpush.bf16.msrb.mxu3 %v4353_v3  ;;  %v4286_v29 = vld [vmem:[#allocation7 + $0x38] sm:$0xf0]  ;;  %v5041_v43 = vld [vmem:[#allocation10 + $0x78] sm:$0xff]  ;;  %v5035_v3 = vld [vmem:[#allocation10 + $0x48] sm:$0xff] }
 0x142   :  { %v4289_v58 = vor.u32 %v4965_v16, %v4286_v29  ;;  %v5061_v16 = vld [vmem:[#allocation10 + $0x118] sm:$0xff] }
 0x143   :  { %v5069_v29 = vld [vmem:[#allocation10 + $0x158] sm:$0xff] }
 0x145   :  { %2759 = vmatpush.bf16.msrb.mxu3 %v4321_v42  ;;  %v5062_v42 = vld [vmem:[#allocation10 + $0x120] sm:$0xff] }
 0x146   :  { %v2177_v50 = vpop.f32.mrf.mxu2 }
 0x147   :  { %v2191_v8 = vpop.f32.mrf.mxu3  ;;  %v2178_v46 = vadd.f32 %v2177_v50, %v2164_v14  ;;  %v5049_v50 = vld [vmem:[#allocation10 + $0xb8] sm:$0xff]  ;;  %v5046_v14 = vld [vmem:[#allocation10 + $0xa0] sm:$0xff] }
 0x149   :  { %v2192_v18 = vadd.f32 %v2191_v8, %v2178_v46  ;;  %2760 = vmatpush.bf16.msrb.mxu3 %v4289_v58  ;;  %v5057_v8 = vld [vmem:[#allocation10 + $0xf8] sm:$0xff]  ;;  %v5027_v46 = vld [vmem:[#allocation10 + $0x8] sm:$0xff] }
 0x14a   :  { %v5085_v58 = vld [vmem:[#allocation10 + $0x1d8] sm:$0xff] }
 0x156   :  { %v2203_v19 = vpop.f32.mrf.mxu0 }
 0x157   :  { %v2217_v41 = vpop.f32.mrf.mxu1  ;;  %v2204_v9 = vadd.f32 %v2203_v19, %v2190_v23  ;;  %v5031_v19 = vld [vmem:[#allocation10 + $0x28] sm:$0xff]  ;;  %v5045_v23 = vld [vmem:[#allocation10 + $0x98] sm:$0xff] }
 0x159   :  { %v2218_v57 = vadd.f32 %v2217_v41, %v2204_v9  ;;  %v5053_v41 = vld [vmem:[#allocation10 + $0xd8] sm:$0xff] }
 0x15a   :  { %v5065_v9 = vld [vmem:[#allocation10 + $0x138] sm:$0xff] }
 0x15e   :  { %v2231_v24 = vpop.f32.mrf.mxu2  ;;  %v2205_v39 = vpop.f32.mrf.mxu0 }
 0x15f   :  { %v2245_v49 = vpop.f32.mrf.mxu3  ;;  %v2206_v28 = vadd.f32 %v2205_v39, %v2192_v18  ;;  %v2232_v30 = vadd.f32 %v2231_v24, %v2218_v57  ;;  %v2219_v60 = vpop.f32.mrf.mxu1  ;;  %v5042_v24 = vld [vmem:[#allocation10 + $0x80] sm:$0xff]  ;;  %v5080_v18 = vld [vmem:[#allocation10 + $0x1b0] sm:$0xff]  ;;  %v5087_v57 = vld [vmem:[#allocation10 + $0x1e8] sm:$0xff] }
 0x160   :  { %v5088_v39 = vld [vmem:[#allocation10 + $0x1f0] sm:$0xff] }
 0x161   :  { %v2220_v61 = vadd.f32 %v2219_v60, %v2206_v28  ;;  %v2246_v63 = vadd.f32 %v2245_v49, %v2232_v30  ;;  %v5050_v49 = vld [vmem:[#allocation10 + $0xc0] sm:$0xff]  ;;  %v5077_v30 = vld [vmem:[#allocation10 + $0x198] sm:$0xff]  ;;  %v5059_v60 = vld [vmem:[#allocation10 + $0x108] sm:$0xff] }
 0x162   :  { %v5078_v28 = vld [vmem:[#allocation10 + $0x1a0] sm:$0xff] }
 0x163   :  { %v2250_v6 = vmax.f32 %v2246_v63, 0.0  ;;  %v5084_v63 = vld [vmem:[#allocation10 + $0x1d0] sm:$0xff] }
 0x166   :  { %v2233_v62 = vpop.f32.mrf.mxu2 }
 0x167   :  { %v2234_v37 = vadd.f32 %v2233_v62, %v2220_v61  ;;  %v2247_v0 = vpop.f32.mrf.mxu3  ;;  %v5067_v61 = vld [vmem:[#allocation10 + $0x148] sm:$0xff]  ;;  %v5076_v62 = vld [vmem:[#allocation10 + $0x190] sm:$0xff] }
 0x169   :  { %v2248_v1 = vadd.f32 %v2247_v0, %v2234_v37  ;;  %v5058_v37 = vld [vmem:[#allocation10 + $0x100] sm:$0xff] }
 0x16a   :  { %v5066_v0 = vld [vmem:[#allocation10 + $0x140] sm:$0xff] }
 0x16b   :  { %v2251_v45 = vmax.f32 %v2248_v1, 0.0  ;;  %v5477_v1 = vld [vmem:[#allocation8] sm:$0xff] }
 0x16d   :  { %v2252_v11 = vpack.c.bf16 %v2251_v45, %v2250_v6 }
 0x16f   :  { %2663 = vmatmul.bf16.vlgmr.msra.gmra.mxu0 %v2252_v11  ;;  %2677 = vmatmul.bf16.vlgmr.msra.gmra.mxu1 %v2252_v11 }
 0x170   :  { %2691 = vmatmul.bf16.vlgmr.msra.gmra.mxu2 %v2252_v11  ;;  %2705 = vmatmul.bf16.vlgmr.msra.gmra.mxu3 %v2252_v11 }
 0x171   :  { %3307 = vmatpush.bf16.msra.mxu0 %v5033_v47  ;;  %3321 = vmatpush.bf16.msra.mxu1 %v5041_v43  ;;  %v2320_v47 = vperm.slane %v5477_v1, 1  ;;  %v5075_v43 = vld [vmem:[#allocation10 + $0x188] sm:$0xff] }
 0x172   :  { %3335 = vmatpush.bf16.msra.mxu2 %v5049_v50  ;;  %3349 = vmatpush.bf16.msra.mxu3 %v5057_v8  ;;  %v5083_v50 = vld [vmem:[#allocation10 + $0x1c8] sm:$0xff]  ;;  %v5074_v8 = vld [vmem:[#allocation10 + $0x180] sm:$0xff] }
 0x175   :  { %3308 = vmatpush.bf16.msra.mxu0 %v5032_v35  ;;  %3322 = vmatpush.bf16.msra.mxu1 %v5040_v12  ;;  %v5082_v35 = vld [vmem:[#allocation10 + $0x1c0] sm:$0xff] }
 0x176   :  { %3336 = vmatpush.bf16.msra.mxu2 %v5048_v31  ;;  %3350 = vmatpush.bf16.msra.mxu3 %v5056_v17 }
 0x179   :  { %3309 = vmatpush.bf16.msra.mxu0 %v5031_v19  ;;  %3323 = vmatpush.bf16.msra.mxu1 %v5039_v7 }
 0x17a   :  { %3337 = vmatpush.bf16.msra.mxu2 %v5047_v20  ;;  %3351 = vmatpush.bf16.msra.mxu3 %v5055_v21 }
 0x17d   :  { %3310 = vmatpush.bf16.msra.mxu0 %v5030_v2  ;;  %3324 = vmatpush.bf16.msra.mxu1 %v5038_v22  ;;  %v2321_v22 = vperm.slane %v5477_v1, 2 }
 0x17e   :  { %3338 = vmatpush.bf16.msra.mxu2 %v5046_v14  ;;  %3352 = vmatpush.bf16.msra.mxu3 %v5054_v36  ;;  %v2322_v14 = vperm.slane %v5477_v1, 3 }
 0x17f   :  { %2719 = vmatmul.bf16.vlgmr.msrb.gmra.mxu0 %v2252_v11  ;;  %2733 = vmatmul.bf16.vlgmr.msrb.gmra.mxu1 %v2252_v11 }
 0x180   :  { %2747 = vmatmul.bf16.vlgmr.msrb.gmra.mxu2 %v2252_v11  ;;  %2761 = vmatmul.bf16.vlgmr.msrb.gmra.mxu3 %v2252_v11  ;;  %v2319_v11 = vperm.slane %v5477_v1, 0 }
 0x181   :  { %3311 = vmatpush.bf16.msra.mxu0 %v5029_v4  ;;  %3325 = vmatpush.bf16.msra.mxu1 %v5037_v5 }
 0x182   :  { %3339 = vmatpush.bf16.msra.mxu2 %v5045_v23  ;;  %3353 = vmatpush.bf16.msra.mxu3 %v5053_v41 }
 0x185   :  { %3312 = vmatpush.bf16.msra.mxu0 %v5028_v25  ;;  %3326 = vmatpush.bf16.msra.mxu1 %v5036_v26 }
 0x186   :  { %3340 = vmatpush.bf16.msra.mxu2 %v5044_v52  ;;  %3354 = vmatpush.bf16.msra.mxu3 %v5052_v27 }
 0x189   :  { %3313 = vmatpush.bf16.msra.mxu0 %v5027_v46  ;;  %3327 = vmatpush.bf16.msra.mxu1 %v5035_v3 }
 0x18a   :  { %3341 = vmatpush.bf16.msra.mxu2 %v5043_v40  ;;  %3355 = vmatpush.bf16.msra.mxu3 %v5051_v51 }
 0x18d   :  { %3314 = vmatpush.bf16.msra.mxu0 %v5026_v33  ;;  %3328 = vmatpush.bf16.msra.mxu1 %v5034_v34 }
 0x18e   :  { %3342 = vmatpush.bf16.msra.mxu2 %v5042_v24  ;;  %3356 = vmatpush.bf16.msra.mxu3 %v5050_v49  ;;  %v2324_v24 = vperm.slane %v5477_v1, 5 }
 0x191   :  { %3363 = vmatpush.bf16.msrb.mxu0 %v5065_v9  ;;  %3377 = vmatpush.bf16.msrb.mxu1 %v5073_v38 }
 0x192   :  { %3391 = vmatpush.bf16.msrb.mxu2 %v5081_v53  ;;  %3405 = vmatpush.bf16.msrb.mxu3 %v5089_v10 }
 0x195   :  { %3364 = vmatpush.bf16.msrb.mxu0 %v5064_v48  ;;  %3378 = vmatpush.bf16.msrb.mxu1 %v5072_v13  ;;  %v2323_v13 = vperm.slane %v5477_v1, 4 }
 0x196   :  { %3392 = vmatpush.bf16.msrb.mxu2 %v5080_v18  ;;  %3406 = vmatpush.bf16.msrb.mxu3 %v5088_v39 }
 0x199   :  { %3365 = vmatpush.bf16.msrb.mxu0 %v5063_v15  ;;  %3379 = vmatpush.bf16.msrb.mxu1 %v5071_v54 }
 0x19a   :  { %3393 = vmatpush.bf16.msrb.mxu2 %v5079_v56  ;;  %3407 = vmatpush.bf16.msrb.mxu3 %v5087_v57  ;;  %v2325_v57 = vperm.slane %v5477_v1, 6 }
 0x19d   :  { %3366 = vmatpush.bf16.msrb.mxu0 %v5062_v42  ;;  %3380 = vmatpush.bf16.msrb.mxu1 %v5070_v55 }
 0x19e   :  { %3394 = vmatpush.bf16.msrb.mxu2 %v5078_v28  ;;  %3408 = vmatpush.bf16.msrb.mxu3 %v5086_v32 }
 0x1a1   :  { %3367 = vmatpush.bf16.msrb.mxu0 %v5061_v16  ;;  %3381 = vmatpush.bf16.msrb.mxu1 %v5069_v29  ;;  %v2326_v16 = vperm.slane %v5477_v1, 7 }
 0x1a2   :  { %3395 = vmatpush.bf16.msrb.mxu2 %v5077_v30  ;;  %3409 = vmatpush.bf16.msrb.mxu3 %v5085_v58 }
 0x1a5   :  { %3368 = vmatpush.bf16.msrb.mxu0 %v5060_v44  ;;  %3382 = vmatpush.bf16.msrb.mxu1 %v5068_v59 }
 0x1a6   :  { %3396 = vmatpush.bf16.msrb.mxu2 %v5076_v62  ;;  %3410 = vmatpush.bf16.msrb.mxu3 %v5084_v63 }
 0x1a9   :  { %3369 = vmatpush.bf16.msrb.mxu0 %v5059_v60  ;;  %3383 = vmatpush.bf16.msrb.mxu1 %v5067_v61 }
 0x1aa   :  { %3397 = vmatpush.bf16.msrb.mxu2 %v5075_v43  ;;  %3411 = vmatpush.bf16.msrb.mxu3 %v5083_v50  ;;  %v5105_v50 = vld [vmem:[%s5507_s6] ss:$0 sm:$0xff] }
 0x1ad   :  { %3370 = vmatpush.bf16.msrb.mxu0 %v5058_v37  ;;  %3384 = vmatpush.bf16.msrb.mxu1 %v5066_v0 }
 0x1ae   :  { %3398 = vmatpush.bf16.msrb.mxu2 %v5074_v8  ;;  %3412 = vmatpush.bf16.msrb.mxu3 %v5082_v35 }
 0x1ec   :  { %v2664_v6 = vpop.f32.mrf.mxu0  ;;  %v2678_v45 = vpop.f32.mrf.mxu1 }
 0x1ed   :  { %v2665_v12 = vadd.f32 %v2664_v6, %v2319_v11  ;;  %v2679_v31 = vadd.f32 %v2678_v45, %v2320_v47 }
 0x1ef   :  { %v2767_v36 = vmax.f32 %v2665_v12, 0.0  ;;  %v2768_v4 = vmax.f32 %v2679_v31, 0.0 }
 0x1f3   :  { %v2692_v17 = vpop.f32.mrf.mxu2  ;;  %v2706_v19 = vpop.f32.mrf.mxu3 }
 0x1f4   :  { %v2666_v7 = vpop.f32.mrf.mxu0  ;;  %v2680_v20 = vpop.f32.mrf.mxu1  ;;  %v2693_v26 = vadd.f32 %v2692_v17, %v2321_v22  ;;  %v2707_v52 = vadd.f32 %v2706_v19, %v2322_v14 }
 0x1f5   :  { %v2667_v21 = vadd.f32 %v2666_v7, %v2319_v11  ;;  %v2681_v2 = vadd.f32 %v2680_v20, %v2320_v47 }
 0x1f6   :  { %v2769_v38 = vmax.f32 %v2693_v26, 0.0  ;;  %v2770_v40 = vmax.f32 %v2707_v52, 0.0 }
 0x1f7   :  { %v2775_v5 = vmax.f32 %v2667_v21, 0.0  ;;  %v2776_v23 = vmax.f32 %v2681_v2, 0.0 }
 0x1f9   :  { %v2783_v41 = vpack.c.bf16 %v2775_v5, %v2767_v36  ;;  %v2784_v25 = vpack.c.bf16 %v2776_v23, %v2768_v4 }
 0x1fb   :  { %v2694_v27 = vpop.f32.mrf.mxu2  ;;  %v2708_v46 = vpop.f32.mrf.mxu3  ;;  %3315 = vmatmul.bf16.vlgmr.msra.gmra.mxu0 %v2783_v41  ;;  %3329 = vmatmul.bf16.vlgmr.msra.gmra.mxu1 %v2784_v25 }
 0x1fc   :  { %v2695_v3 = vadd.f32 %v2694_v27, %v2321_v22  ;;  %v2709_v33 = vadd.f32 %v2708_v46, %v2322_v14  ;;  %v2720_v34 = vpop.f32.mrf.mxu0  ;;  %v2734_v9 = vpop.f32.mrf.mxu1 }
 0x1fd   :  { %v2721_v10 = vadd.f32 %v2720_v34, %v2323_v13  ;;  %v2735_v15 = vadd.f32 %v2734_v9, %v2324_v24 }
 0x1fe   :  { %v2777_v51 = vmax.f32 %v2695_v3, 0.0  ;;  %v2778_v48 = vmax.f32 %v2709_v33, 0.0 }
 0x1ff   :  { %v2771_v29 = vmax.f32 %v2721_v10, 0.0  ;;  %v2772_v28 = vmax.f32 %v2735_v15, 0.0 }
 0x200   :  { %v2785_v49 = vpack.c.bf16 %v2777_v51, %v2769_v38  ;;  %v2786_v53 = vpack.c.bf16 %v2778_v48, %v2770_v40 }
 0x202   :  { %3343 = vmatmul.bf16.vlgmr.msra.gmra.mxu2 %v2785_v49  ;;  %3357 = vmatmul.bf16.vlgmr.msra.gmra.mxu3 %v2786_v53 }
 0x203   :  { %v2748_v54 = vpop.f32.mrf.mxu2  ;;  %v2762_v18 = vpop.f32.mrf.mxu3 }
 0x204   :  { %v2722_v39 = vpop.f32.mrf.mxu0  ;;  %v2736_v42 = vpop.f32.mrf.mxu1  ;;  %v2749_v58 = vadd.f32 %v2748_v54, %v2325_v57  ;;  %v2763_v60 = vadd.f32 %v2762_v18, %v2326_v16 }
 0x205   :  { %v2723_v55 = vadd.f32 %v2722_v39, %v2323_v13  ;;  %v2737_v56 = vadd.f32 %v2736_v42, %v2324_v24 }
 0x206   :  { %v2773_v0 = vmax.f32 %v2749_v58, 0.0  ;;  %v2774_v6 = vmax.f32 %v2763_v60, 0.0 }
 0x207   :  { %v2779_v32 = vmax.f32 %v2723_v55, 0.0  ;;  %v2780_v44 = vmax.f32 %v2737_v56, 0.0 }
 0x209   :  { %v2787_v59 = vpack.c.bf16 %v2779_v32, %v2771_v29  ;;  %v2788_v30 = vpack.c.bf16 %v2780_v44, %v2772_v28 }
 0x20b   :  { %v2750_v61 = vpop.f32.mrf.mxu2  ;;  %v2764_v62 = vpop.f32.mrf.mxu3  ;;  %3371 = vmatmul.bf16.vlgmr.msrb.gmra.mxu0 %v2787_v59  ;;  %3385 = vmatmul.bf16.vlgmr.msrb.gmra.mxu1 %v2788_v30 }
 0x20c   :  { %v2751_v63 = vadd.f32 %v2750_v61, %v2325_v57  ;;  %v2765_v37 = vadd.f32 %v2764_v62, %v2326_v16 }
 0x20e   :  { %v2781_v45 = vmax.f32 %v2751_v63, 0.0  ;;  %v2782_v11 = vmax.f32 %v2765_v37, 0.0 }
 0x210   :  { %v2789_v47 = vpack.c.bf16 %v2781_v45, %v2773_v0  ;;  %v2790_v1 = vpack.c.bf16 %v2782_v11, %v2774_v6 }
 0x212   :  { %3399 = vmatmul.bf16.vlgmr.msrb.gmra.mxu2 %v2789_v47  ;;  %3413 = vmatmul.bf16.vlgmr.msrb.gmra.mxu3 %v2790_v1 }
 0x278   :  { %v3316_v43 = vpop.f32.mrf.mxu0  ;;  %v3330_v8 = vpop.f32.mrf.mxu1 }
 0x279   :  { %v3317_v35 = vadd.f32 %v5105_v50, %v3316_v43 }
 0x27b   :  { %v3331_v19 = vadd.f32 %v3330_v8, %v3317_v35 }
 0x280   :  { %v3318_v12 = vpop.f32.mrf.mxu0  ;;  %v3332_v7 = vpop.f32.mrf.mxu1 }
 0x281   :  { %v3319_v21 = vadd.f32 %v5105_v50, %v3318_v12 }
 0x283   :  { %v3333_v4 = vadd.f32 %v3332_v7, %v3319_v21 }
 0x285   :  { %v3344_v31 = vpop.f32.mrf.mxu2  ;;  %v3358_v17 = vpop.f32.mrf.mxu3 }
 0x286   :  { %v3345_v20 = vadd.f32 %v3344_v31, %v3331_v19 }
 0x288   :  { %v3359_v2 = vadd.f32 %v3358_v17, %v3345_v20  ;;  %v3372_v22 = vpop.f32.mrf.mxu0  ;;  %v3386_v41 = vpop.f32.mrf.mxu1 }
 0x28a   :  { %v3373_v5 = vadd.f32 %v3372_v22, %v3359_v2 }
 0x28c   :  { %v3387_v25 = vadd.f32 %v3386_v41, %v3373_v5 }
 0x28d   :  { %v3346_v14 = vpop.f32.mrf.mxu2  ;;  %v3360_v36 = vpop.f32.mrf.mxu3 }
 0x28e   :  { %v3347_v23 = vadd.f32 %v3346_v14, %v3333_v4 }
 0x290   :  { %v3361_v26 = vadd.f32 %v3360_v36, %v3347_v23  ;;  %v3374_v27 = vpop.f32.mrf.mxu0  ;;  %v3388_v38 = vpop.f32.mrf.mxu1 }
 0x292   :  { %v3375_v34 = vadd.f32 %v3374_v27, %v3361_v26 }
 0x294   :  { %v3389_v51 = vadd.f32 %v3388_v38, %v3375_v34 }
 0x295   :  { %v3400_v52 = vpop.f32.mrf.mxu2  ;;  %v3414_v3 = vpop.f32.mrf.mxu3 }
 0x296   :  { %v3401_v46 = vadd.f32 %v3400_v52, %v3387_v25 }
 0x298   :  { %v3415_v33 = vadd.f32 %v3414_v3, %v3401_v46 }
 0x29a   :  { %v3419_v9 = vpack.c.bf16 %v3415_v33, %v3415_v33 }
 0x29c   :  { %v3423_v40 = vrot.slane %v3419_v9, 3 }
 0x29d   :  { %v3402_v48 = vpop.f32.mrf.mxu2  ;;  %v3416_v39 = vpop.f32.mrf.mxu3 }
 0x29e   :  { %v3428_v13 = vsel %vm3425_vm0, %v3419_v9, %v3423_v40  ;;  %v3430_v24 = vsel %vm3429_vm1, %v3419_v9, %v3423_v40  ;;  %v3434_v49 = vsel %vm3433_vm2, %v3419_v9, %v3423_v40  ;;  %v3438_v53 = vsel %vm3437_vm3, %v3419_v9, %v3423_v40 }
 0x29f   :  { %v3432_v10 = vrot.slane %v3430_v24, 1  ;;  %v3436_v15 = vrot.slane %v3434_v49, 2  ;;  %v3440_v54 = vrot.slane %v3438_v53, 3  ;;  %3461 = vst [vmem:[#allocation11] sm:$0x1] %v3428_v13  ;;  %v3403_v18 = vadd.f32 %v3402_v48, %v3389_v51 }
 0x2a1   :  { %3462 = vst [vmem:[#allocation11 + $0x1] sm:$0x1] %v3432_v10  ;;  %v3417_v42 = vadd.f32 %v3416_v39, %v3403_v18 }
 0x2a2   :  { %3463 = vst [vmem:[#allocation11 + $0x2] sm:$0x1] %v3436_v15 }
 0x2a3   :  { %3464 = vst [vmem:[#allocation11 + $0x3] sm:$0x1] %v3440_v54  ;;  %v3420_v55 = vpack.c.bf16 %v3417_v42, %v3417_v42 }
 0x2a5   :  { %v3424_v56 = vrot.slane %v3420_v55, 3 }
 0x2a7   :  { %v3443_v57 = vsel %vm3425_vm0, %v3420_v55, %v3424_v56  ;;  %v3444_v16 = vsel %vm3429_vm1, %v3420_v55, %v3424_v56  ;;  %v3447_v29 = vsel %vm3433_vm2, %v3420_v55, %v3424_v56  ;;  %v3450_v28 = vsel %vm3437_vm3, %v3420_v55, %v3424_v56 }
 0x2a8   :  { %v3446_v32 = vrot.slane %v3444_v16, 1  ;;  %v3449_v44 = vrot.slane %v3447_v29, 2  ;;  %v3452_v59 = vrot.slane %v3450_v28, 3  ;;  %3465 = vst [vmem:[#allocation11 + $0x4] sm:$0x1] %v3443_v57 }
 0x2aa   :  { %3466 = vst [vmem:[#allocation11 + $0x5] sm:$0x1] %v3446_v32 }
 0x2ab   :  { %3467 = vst [vmem:[#allocation11 + $0x6] sm:$0x1] %v3449_v44 }
 0x2ac   :  { %3468 = vst [vmem:[#allocation11 + $0x7] sm:$0x1] %v3452_v59 }
 0x2ad   :  { %3472 = vsyncadd [#allocation4], 112  ;;  %s3475_s8 = sshll.u32 %s5508_s7, 4  ;;  %s5269_s9 = smov [#allocation11]   ;;  %s3476_s8 = int_to_ptr.hbm [resolvable:$true] %s3475_s8 }
 0x2ae   :  { %s3473_s10 = sshll.u32 %s5269_s9, 4  ;;  %s5270_s11 = smov 16   ;;  %s3474_s10 = int_to_ptr.vmem [resolvable:$true] %s3473_s10 }
 0x2af   :  { %s5271_s12 = smov 1  }
 0x2b0   :  { %3481 = dma.vmem_to_hbm [thread:$0]  %s3474_s10, 16, %s3476_s8, [#allocation4], %s5270_s11, %s5270_s11, %s5271_s12  }
 0x2b1   :  { %5256 = dma.done.wait [#allocation4], 128  }
 0x2b2   :  { %5257 = vsyncadd [#allocation4], 4294967168 }
 0x2b3   :  { %3486 = vsyncpa [#allocation3], 1 }
 0x2b4   :  { %3487 = vsyncpa [#allocation6], 1 }
 0x2b5   :  { %3488 = vsyncpa [#allocation9], 1 }
 0x2b6   :  { %3489 = vsyncpa [#allocation4], 1 }

</bundles_post_ra>
